<compile_context>
chip_gen: v7x
topology: tpu7x:2x2x1
jax: 0.10.0
libtpu: 0.0.40
codegen_flags: <defaults>
</compile_context>

<pallas_src>
import jax
import jax.numpy as jnp
from jax.experimental import pallas as pl
from jax.experimental.pallas import tpu as pltpu

# SSIM constants pre-scaled by 81 = 9**2 so the raw 3x3 box *sums* can be used directly
# (mu = S/9; both SSIM_n and SSIM_d then carry a common 81**2 factor that cancels).
_C1 = 81.0 * (0.01 ** 2)
_C2 = 81.0 * (0.03 ** 2)


def _ssim_kernel(xp_ref, yp_ref, out_ref):
    # xp_ref / yp_ref: (H+2, W+2, Bt) reflection-padded inputs, batch on the lane axis.
    # out_ref:         (Ht,  W,   Bt) SSIM-loss strip for output rows [h*Ht, h*Ht + Ht).
    Ht, W, _ = out_ref.shape
    h = pl.program_id(1)
    row0 = pl.multiple_of(h * Ht, Ht)

    xp = xp_ref[pl.ds(row0, Ht + 2), :, :]        # (Ht+2, W+2, Bt)
    yp = yp_ref[pl.ds(row0, Ht + 2), :, :]

    # Separable 3x3 box *sum* (stride 1, valid on the padded window).
    def box(a):
        r = a[0:Ht] + a[1:Ht + 1] + a[2:Ht + 2]            # H taps: free leading-dim shifts
        return r[:, 0:W] + r[:, 1:W + 1] + r[:, 2:W + 2]   # W taps: sublane shifts

    sx = box(xp)
    sy = box(yp)
    sxy = box(xp * yp)
    sxxyy = box(xp * xp + yp * yp)     # sigma_x + sigma_y only ever used as a sum

    a2 = sx * sy
    a2 = a2 + a2                       # 2 * Sx * Sy
    b2 = sx * sx + sy * sy             # Sx**2 + Sy**2
    n = (a2 + _C1) * (18.0 * sxy + (_C2 - a2))       # 81**2 * SSIM_n
    d = (b2 + _C1) * (9.0 * sxxyy + (_C2 - b2))      # 81**2 * SSIM_d  (>= _C1*_C2 > 0)

    # (1 - n/d) / 2 == (d - n) / (2*d); the reciprocal runs on the (otherwise idle) EUP.
    loss = (d - n) * pl.reciprocal(d + d, approx=False)
    out_ref[...] = jnp.clip(loss, 0.0, 1.0)


def _vmem_budget_bytes():
    cap = 64 * 1024 * 1024  # conservative default: v7x per-TensorCore VMEM
    try:
        cap = int(pltpu.get_tpu_info().vmem_capacity_bytes)
    except Exception:
        pass
    # Leave headroom for compiler-internal scratch and other live allocations.
    return max(32 * 1024 * 1024, min(3 * cap // 4, cap - 24 * 1024 * 1024))


def _choose_tiling(B_pad, H, W, budget):
    """Pick (Bt, Ht): batch tile on the lane axis and output H-strip height."""
    Hp, Wp = H + 2, W + 2

    def vmem_estimate(bt, ht):
        in_b = 2 * 2 * Hp * Wp * bt * 4          # 2 inputs x double buffer (full spatial block)
        out_b = 2 * ht * W * bt * 4              # output double buffer
        tmp_b = 12 * (ht + 2) * Wp * bt * 4      # live whole-strip f32 temporaries
        return in_b + out_b + tmp_b

    bt_cands = [c for c in (512, 256, 128) if B_pad % c == 0] or [B_pad]
    h_divs = [d for d in range(H, 0, -1) if H % d == 0]

    for bt in bt_cands:                          # prefer the largest batch tile ...
        for ht in h_divs:                        # ... then the largest strip that fits
            if vmem_estimate(bt, ht) > budget:
                continue
            # v7x megacore: make sure the 'parallel' grid has >= 2 steps when cheap to do so.
            if (B_pad // bt) * (H // ht) < 2:
                for d in h_divs:
                    if d < ht and 2 <= H // d <= 8 and vmem_estimate(bt, d) <= budget:
                        ht = d
                        break
            return bt, ht
    # Note: images so large that even a single (Hp, Wp, 128) block overflows the budget would
    # need halo'd H input blocks (manual DMA); not needed for these shapes.
    return bt_cands[-1], h_divs[-1]


@jax.jit
def ssim_loss(x, y):
    """x, y: (N, C, H, W) float32. Returns the (N, C, H, W) SSIM loss map (PyTorch SSIM_Loss)."""
    N, C, H, W = x.shape
    if H < 2 or W < 2:
        raise ValueError("ReflectionPad2d(1) requires H >= 2 and W >= 2.")
    B = N * C
    Hp, Wp = H + 2, W + 2

    LANES = 128
    B_pad = -(-B // LANES) * LANES
    budget = _vmem_budget_bytes()
    Bt, Ht = _choose_tiling(B_pad, H, W, budget)
    n_b, n_h = B_pad // Bt, H // Ht

    def prep(a):
        # (N,C,H,W) -> (H+2, W+2, B_pad): batch on lanes plus the reflection halo, all of which
        # fuses into the single relayout pass XLA already needs for the transpose.
        a = a.reshape(B, H, W).astype(jnp.float32)
        a = jnp.transpose(a, (1, 2, 0))
        a = jnp.pad(a, ((1, 1), (1, 1), (0, 0)), mode="reflect")
        if B_pad != B:
            a = jnp.pad(a, ((0, 0), (0, 0), (0, B_pad - B)))
        return a

    out = pl.pallas_call(
        _ssim_kernel,
        out_shape=jax.ShapeDtypeStruct((H, W, B_pad), jnp.float32),
        grid_spec=pltpu.PrefetchScalarGridSpec(
            num_scalar_prefetch=0,
            grid=(n_b, n_h),
            in_specs=[
                # Full padded spatial extent; index_map ignores the H-strip index so the block
                # is only re-DMA'd when the batch tile changes.
                pl.BlockSpec((Hp, Wp, Bt), lambda b, h: (0, 0, b)),
                pl.BlockSpec((Hp, Wp, Bt), lambda b, h: (0, 0, b)),
            ],
            out_specs=pl.BlockSpec((Ht, W, Bt), lambda b, h: (h, 0, b)),
        ),
        compiler_params=pltpu.CompilerParams(
            dimension_semantics=("parallel", "parallel"),
            vmem_limit_bytes=budget,
        ),
    )(prep(x), prep(y))

    if B_pad != B:
        out = out[:, :, :B]
    return jnp.transpose(out, (2, 0, 1)).reshape(N, C, H, W)


def _ssim_loss_ref(x, y):
    # Pure-JAX reference mirroring the PyTorch forward exactly.
    xp = jnp.pad(x, ((0, 0), (0, 0), (1, 1), (1, 1)), mode="reflect")
    yp = jnp.pad(y, ((0, 0), (0, 0), (1, 1), (1, 1)), mode="reflect")

    def pool(a):  # 3x3 avg pool, stride 1, valid
        return jax.lax.reduce_window(
            a, 0.0, jax.lax.add, (1, 1, 3, 3), (1, 1, 1, 1), "VALID") / 9.0

    c1, c2 = 0.01 ** 2, 0.03 ** 2
    mu_x, mu_y = pool(xp), pool(yp)
    sigma_x = pool(xp ** 2) - mu_x ** 2
    sigma_y = pool(yp ** 2) - mu_y ** 2
    sigma_xy = pool(xp * yp) - mu_x * mu_y
    n = (2 * mu_x * mu_y + c1) * (2 * sigma_xy + c2)
    d = (mu_x ** 2 + mu_y ** 2 + c1) * (sigma_x + sigma_y + c2)
    return jnp.clip((1 - n / d) / 2, 0.0, 1.0)


if __name__ == "__main__":
    key = jax.random.PRNGKey(0)
    kx, ky = jax.random.split(key)
    N, C, H, W = 2, 4, 16, 16
    x = jax.random.uniform(kx, (N, C, H, W), dtype=jnp.float32)
    y = jax.random.uniform(ky, (N, C, H, W), dtype=jnp.float32)

    out = jax.block_until_ready(ssim_loss(x, y))
    ref = jax.block_until_ready(_ssim_loss_ref(x, y))

    assert out.shape == (N, C, H, W)
    max_err = float(jnp.max(jnp.abs(out - ref)))
    assert jnp.allclose(out, ref, atol=2e-5, rtol=2e-5), max_err
    print("KERNEL_OK")
</pallas_src>

<mosaic_0001>
module attributes {stable_mosaic.version = 11 : i64} {
  func.func @_ssim_kernel(%arg0: i32, %arg1: i32, %arg2: memref<18x18x128xf32, #tpu.memory_space<vmem>>, %arg3: memref<18x18x128xf32, #tpu.memory_space<vmem>>, %arg4: memref<8x16x128xf32, #tpu.memory_space<vmem>>) attributes {dimension_semantics = [#tpu.dimension_semantics<parallel>, #tpu.dimension_semantics<parallel>], iteration_bounds = array<i64: 1, 2>, scalar_prefetch = 0 : i64, scratch_operands = 0 : i64, tpu.core_type = #tpu.core_type<tc>, window_params = [{transform_indices = @transform_0, window_bounds = array<i64: 18, 18, 128>}, {transform_indices = @transform_1, window_bounds = array<i64: 18, 18, 128>}, {transform_indices = @transform_2, window_bounds = array<i64: 8, 16, 128>}]} {
    %c8_i32 = arith.constant 8 : i32
    %0 = arith.muli %arg1, %c8_i32 : i32
    %1 = tpu.assume_multiple %0, 8 : i32
    %2 = arith.index_cast %1 : i32 to index
    %c0 = arith.constant 0 : index
    %c0_0 = arith.constant 0 : index
    %3 = vector.load %arg2[%2, %c0, %c0_0] : memref<18x18x128xf32, #tpu.memory_space<vmem>>, vector<10x18x128xf32>
    %4 = arith.index_cast %1 : i32 to index
    %c0_1 = arith.constant 0 : index
    %c0_2 = arith.constant 0 : index
    %5 = vector.load %arg3[%4, %c0_1, %c0_2] : memref<18x18x128xf32, #tpu.memory_space<vmem>>, vector<10x18x128xf32>
    %6 = vector.extract_strided_slice %3 {offsets = [0, 0, 0], sizes = [8, 18, 128], strides = [1, 1, 1]} : vector<10x18x128xf32> to vector<8x18x128xf32>
    %7 = vector.extract_strided_slice %3 {offsets = [1, 0, 0], sizes = [8, 18, 128], strides = [1, 1, 1]} : vector<10x18x128xf32> to vector<8x18x128xf32>
    %8 = arith.addf %6, %7 : vector<8x18x128xf32>
    %9 = vector.extract_strided_slice %3 {offsets = [2, 0, 0], sizes = [8, 18, 128], strides = [1, 1, 1]} : vector<10x18x128xf32> to vector<8x18x128xf32>
    %10 = arith.addf %8, %9 : vector<8x18x128xf32>
    %11 = vector.extract_strided_slice %10 {offsets = [0, 0, 0], sizes = [8, 16, 128], strides = [1, 1, 1]} : vector<8x18x128xf32> to vector<8x16x128xf32>
    %12 = vector.extract_strided_slice %10 {offsets = [0, 1, 0], sizes = [8, 16, 128], strides = [1, 1, 1]} : vector<8x18x128xf32> to vector<8x16x128xf32>
    %13 = arith.addf %11, %12 : vector<8x16x128xf32>
    %14 = vector.extract_strided_slice %10 {offsets = [0, 2, 0], sizes = [8, 16, 128], strides = [1, 1, 1]} : vector<8x18x128xf32> to vector<8x16x128xf32>
    %15 = arith.addf %13, %14 : vector<8x16x128xf32>
    %16 = vector.extract_strided_slice %5 {offsets = [0, 0, 0], sizes = [8, 18, 128], strides = [1, 1, 1]} : vector<10x18x128xf32> to vector<8x18x128xf32>
    %17 = vector.extract_strided_slice %5 {offsets = [1, 0, 0], sizes = [8, 18, 128], strides = [1, 1, 1]} : vector<10x18x128xf32> to vector<8x18x128xf32>
    %18 = arith.addf %16, %17 : vector<8x18x128xf32>
    %19 = vector.extract_strided_slice %5 {offsets = [2, 0, 0], sizes = [8, 18, 128], strides = [1, 1, 1]} : vector<10x18x128xf32> to vector<8x18x128xf32>
    %20 = arith.addf %18, %19 : vector<8x18x128xf32>
    %21 = vector.extract_strided_slice %20 {offsets = [0, 0, 0], sizes = [8, 16, 128], strides = [1, 1, 1]} : vector<8x18x128xf32> to vector<8x16x128xf32>
    %22 = vector.extract_strided_slice %20 {offsets = [0, 1, 0], sizes = [8, 16, 128], strides = [1, 1, 1]} : vector<8x18x128xf32> to vector<8x16x128xf32>
    %23 = arith.addf %21, %22 : vector<8x16x128xf32>
    %24 = vector.extract_strided_slice %20 {offsets = [0, 2, 0], sizes = [8, 16, 128], strides = [1, 1, 1]} : vector<8x18x128xf32> to vector<8x16x128xf32>
    %25 = arith.addf %23, %24 : vector<8x16x128xf32>
    %26 = arith.mulf %3, %5 : vector<10x18x128xf32>
    %27 = vector.extract_strided_slice %26 {offsets = [0, 0, 0], sizes = [8, 18, 128], strides = [1, 1, 1]} : vector<10x18x128xf32> to vector<8x18x128xf32>
    %28 = vector.extract_strided_slice %26 {offsets = [1, 0, 0], sizes = [8, 18, 128], strides = [1, 1, 1]} : vector<10x18x128xf32> to vector<8x18x128xf32>
    %29 = arith.addf %27, %28 : vector<8x18x128xf32>
    %30 = vector.extract_strided_slice %26 {offsets = [2, 0, 0], sizes = [8, 18, 128], strides = [1, 1, 1]} : vector<10x18x128xf32> to vector<8x18x128xf32>
    %31 = arith.addf %29, %30 : vector<8x18x128xf32>
    %32 = vector.extract_strided_slice %31 {offsets = [0, 0, 0], sizes = [8, 16, 128], strides = [1, 1, 1]} : vector<8x18x128xf32> to vector<8x16x128xf32>
    %33 = vector.extract_strided_slice %31 {offsets = [0, 1, 0], sizes = [8, 16, 128], strides = [1, 1, 1]} : vector<8x18x128xf32> to vector<8x16x128xf32>
    %34 = arith.addf %32, %33 : vector<8x16x128xf32>
    %35 = vector.extract_strided_slice %31 {offsets = [0, 2, 0], sizes = [8, 16, 128], strides = [1, 1, 1]} : vector<8x18x128xf32> to vector<8x16x128xf32>
    %36 = arith.addf %34, %35 : vector<8x16x128xf32>
    %37 = arith.mulf %3, %3 : vector<10x18x128xf32>
    %38 = arith.mulf %5, %5 : vector<10x18x128xf32>
    %39 = arith.addf %37, %38 : vector<10x18x128xf32>
    %40 = vector.extract_strided_slice %39 {offsets = [0, 0, 0], sizes = [8, 18, 128], strides = [1, 1, 1]} : vector<10x18x128xf32> to vector<8x18x128xf32>
    %41 = vector.extract_strided_slice %39 {offsets = [1, 0, 0], sizes = [8, 18, 128], strides = [1, 1, 1]} : vector<10x18x128xf32> to vector<8x18x128xf32>
    %42 = arith.addf %40, %41 : vector<8x18x128xf32>
    %43 = vector.extract_strided_slice %39 {offsets = [2, 0, 0], sizes = [8, 18, 128], strides = [1, 1, 1]} : vector<10x18x128xf32> to vector<8x18x128xf32>
    %44 = arith.addf %42, %43 : vector<8x18x128xf32>
    %45 = vector.extract_strided_slice %44 {offsets = [0, 0, 0], sizes = [8, 16, 128], strides = [1, 1, 1]} : vector<8x18x128xf32> to vector<8x16x128xf32>
    %46 = vector.extract_strided_slice %44 {offsets = [0, 1, 0], sizes = [8, 16, 128], strides = [1, 1, 1]} : vector<8x18x128xf32> to vector<8x16x128xf32>
    %47 = arith.addf %45, %46 : vector<8x16x128xf32>
    %48 = vector.extract_strided_slice %44 {offsets = [0, 2, 0], sizes = [8, 16, 128], strides = [1, 1, 1]} : vector<8x18x128xf32> to vector<8x16x128xf32>
    %49 = arith.addf %47, %48 : vector<8x16x128xf32>
    %50 = arith.mulf %15, %25 : vector<8x16x128xf32>
    %51 = arith.addf %50, %50 : vector<8x16x128xf32>
    %52 = arith.mulf %15, %15 : vector<8x16x128xf32>
    %53 = arith.mulf %25, %25 : vector<8x16x128xf32>
    %54 = arith.addf %52, %53 : vector<8x16x128xf32>
    %cst = arith.constant 8.100000e-03 : f32
    %55 = vector.broadcast %cst : f32 to vector<8x16x128xf32>
    %56 = arith.addf %51, %55 : vector<8x16x128xf32>
    %cst_3 = arith.constant 1.800000e+01 : f32
    %57 = vector.broadcast %cst_3 : f32 to vector<8x16x128xf32>
    %58 = arith.mulf %57, %36 : vector<8x16x128xf32>
    %cst_4 = arith.constant 7.290000e-02 : f32
    %59 = vector.broadcast %cst_4 : f32 to vector<8x16x128xf32>
    %60 = arith.subf %59, %51 : vector<8x16x128xf32>
    %61 = arith.addf %58, %60 : vector<8x16x128xf32>
    %62 = arith.mulf %56, %61 : vector<8x16x128xf32>
    %cst_5 = arith.constant 8.100000e-03 : f32
    %63 = vector.broadcast %cst_5 : f32 to vector<8x16x128xf32>
    %64 = arith.addf %54, %63 : vector<8x16x128xf32>
    %cst_6 = arith.constant 9.000000e+00 : f32
    %65 = vector.broadcast %cst_6 : f32 to vector<8x16x128xf32>
    %66 = arith.mulf %65, %49 : vector<8x16x128xf32>
    %cst_7 = arith.constant 7.290000e-02 : f32
    %67 = vector.broadcast %cst_7 : f32 to vector<8x16x128xf32>
    %68 = arith.subf %67, %54 : vector<8x16x128xf32>
    %69 = arith.addf %66, %68 : vector<8x16x128xf32>
    %70 = arith.mulf %64, %69 : vector<8x16x128xf32>
    %71 = arith.subf %70, %62 : vector<8x16x128xf32>
    %72 = arith.addf %70, %70 : vector<8x16x128xf32>
    %73 = tpu.reciprocal %72 : vector<8x16x128xf32> -> vector<8x16x128xf32>
    %74 = arith.mulf %71, %73 : vector<8x16x128xf32>
    %cst_8 = arith.constant 0.000000e+00 : f32
    %cst_9 = arith.constant 1.000000e+00 : f32
    %75 = vector.broadcast %cst_8 : f32 to vector<8x16x128xf32>
    %76 = arith.maximumf %75, %74 : vector<8x16x128xf32>
    %77 = vector.broadcast %cst_9 : f32 to vector<8x16x128xf32>
    %78 = arith.minimumf %77, %76 : vector<8x16x128xf32>
    %c0_10 = arith.constant 0 : index
    %c0_11 = arith.constant 0 : index
    %c0_12 = arith.constant 0 : index
    %79 = vector.load %arg4[%c0_10, %c0_11, %c0_12] : memref<8x16x128xf32, #tpu.memory_space<vmem>>, vector<8x16x128xf32>
    tpu.vector_store %arg4[%c0_10, %c0_11, %c0_12], %78 {strides = array<i32>} : memref<8x16x128xf32, #tpu.memory_space<vmem>>, vector<8x16x128xf32>,
    return
  }
  func.func @transform_0(%arg0: i32, %arg1: i32) -> (i32, i32, i32) {
    %c0_i32 = arith.constant 0 : i32
    %c0_i32_0 = arith.constant 0 : i32
    %c0_i32_1 = arith.constant 0 : i32
    return %c0_i32, %c0_i32_0, %arg0 : i32, i32, i32
  }
  func.func @transform_1(%arg0: i32, %arg1: i32) -> (i32, i32, i32) {
    %c0_i32 = arith.constant 0 : i32
    %c0_i32_0 = arith.constant 0 : i32
    %c0_i32_1 = arith.constant 0 : i32
    return %c0_i32, %c0_i32_0, %arg0 : i32, i32, i32
  }
  func.func @transform_2(%arg0: i32, %arg1: i32) -> (i32, i32, i32) {
    %c0_i32 = arith.constant 0 : i32
    %c0_i32_0 = arith.constant 0 : i32
    return %arg1, %c0_i32, %arg0 : i32, i32, i32
  }
}

</mosaic_0001>

<bundles_post_ra>
// kernel: ssim_loss.1
= control target key start
LH: loop header
LB: loop body
LE: loop exit
PB: predicated region body
PF: predicated region fallthrough
CT: control target
= control target key end

     0   :  { %s1826_s9 = smov 0   ;;  %s1828_s10 = smov 0   ;;  %s3712_s0 = inlined_call_operand.vmem [shape: f32[18,18,128], index: 0, kind: input, shape index: {}]   ;;  %s3713_s1 = inlined_call_operand.vmem [shape: f32[18,18,128], index: 1, kind: input, shape index: {}]   ;;  %s3714_s2 = inlined_call_operand.vmem [shape: f32[16,16,128], index: 2, kind: output, shape index: {}]  }
   0x1   :  { %s1830_s11 = smov 0  }
   0x2 LB: > { %s21_s12 = sadd.s32 1, %s1805_s10  ;;  %p1691_p0 = scmp.ge.s32.totalorder %s1809_s11, 1  ;;  %s1809_s11 = sphi %s1830_s11, %s12_s11   ;;  %s1805_s10 = sphi %s1828_s10, %s4148_s10   ;;  %s1801_s9 = sphi %s1826_s9, %s4147_s9  }
   0x3   : > { %p22_p1 = scmp.ge.s32.totalorder %s21_s12, 2  ;;  %p134_p2 = scmp.lt.s32.totalorder %s1809_s11, 3 }
   0x5   : > { %s4150_s12 = smov (%p22_p1, %s21_s12), 0  ;;  %p135_p3 = pnand %p1691_p0, %p134_p2 }
   0x7   : > { %138 = sbr.rel (%p135_p3) target bundleno = 316 (0x13c), region = 28 }
   0xe   : > { %s1696_s13 = smul.u32 192, %s1801_s9  ;;  %vm317_vm0 = vcmask 1046528   ;;  %vm390_vm1 = vcmask 1045504   ;;  %s1692_s20 = sshll.u32 %s1801_s9, 3 }
   0xf   : > { %p3582_p4 = scmp.lt.s32.totalorder %s1692_s20, 15 }
  0x10   : > { %s1852_s16 = scalar_lea.vmem %s3712_s0, %s1696_s13  ;;  %s2014_s19 = scalar_lea.vmem %s3713_s1, %s1696_s13 }
  0x11   : > { %v1855_v0 = vld [vmem:[%s1852_s16] sm:$0xff]  ;;  %v1858_v1 = vld [vmem:[%s1852_s16 + $0x8] sm:$0xff]  ;;  %v1861_v2 = vld [vmem:[%s1852_s16 + $0x18] sm:$0xff]  ;;  %s4152_s20 = smov (!%p3582_p4, %s1692_s20), 15 }
  0x12   : > { %3826 = vst [vmem:[#allocation2_spill] sm:$0xff] %v1858_v1  ;;  %3827 = vst [vmem:[#allocation3_spill] sm:$0xff] %v1861_v2  ;;  %v1864_v3 = vld [vmem:[%s1852_s16 + $0x10] sm:$0x3]  ;;  %v1867_v4 = vld [vmem:[%s1852_s16 + $0x20] sm:$0xff]  ;;  %v245_v12 = vadd.f32 %v1861_v2, %v1855_v0  ;;  %v1894_v13 = vmul.f32 %v1855_v0, %v1855_v0  ;;  %v1911_v19 = vmul.f32 %v1858_v1, %v1858_v1  ;;  %s1699_s22 = sshll.u32 %s4152_s20, 4 }
  0x13   : > { %3828 = vst [vmem:[#allocation4_spill] sm:$0xff] %v1864_v3  ;;  %3829 = vst [vmem:[#allocation5_spill] sm:$0xff] %v1867_v4  ;;  %v1870_v5 = vld [vmem:[%s1852_s16 + $0x28] sm:$0x3]  ;;  %v1873_v6 = vld [vmem:[%s1852_s16 + $0x30] sm:$0xff]  ;;  %v246_v17 = vadd.f32 %v1867_v4, %v1858_v1  ;;  %v1915_v20 = vmul.f32 %v1864_v3, %v1864_v3  ;;  %v1934_v27 = vmul.f32 %v1861_v2, %v1861_v2  ;;  %s3669_s25 = scalar_lea.vmem %s3714_s2, %s1699_s22 }
  0x14   : > { %3830 = vst [vmem:[#allocation6_spill] sm:$0xff] %v1870_v5  ;;  %3831 = vst [vmem:[#allocation7_spill] sm:$0xff] %v1873_v6  ;;  %v1876_v7 = vld [vmem:[%s1852_s16 + $0x38] sm:$0xff]  ;;  %v1879_v8 = vld [vmem:[%s1852_s16 + $0x40] sm:$0x3]  ;;  %v247_v18 = vadd.f32 %v1870_v5, %v1864_v3  ;;  %v248_v24 = vadd.f32 %v1873_v6, %v1861_v2  ;;  %v1953_v34 = vmul.f32 %v1867_v4, %v1867_v4 }
  0x15   : > { %3832 = vst [vmem:[#allocation8_spill] sm:$0xff] %v1876_v7  ;;  %3833 = vst [vmem:[#allocation9_spill] sm:$0xff] %v1879_v8  ;;  %v1882_v9 = vld [vmem:[%s1852_s16 + $0x48] sm:$0xff]  ;;  %v1885_v10 = vld [vmem:[%s1852_s16 + $0x50] sm:$0xff]  ;;  %v249_v25 = vadd.f32 %v1876_v7, %v1867_v4  ;;  %v250_v26 = vadd.f32 %v1879_v8, %v1870_v5  ;;  %v1971_v41 = vadd.f32 %v245_v12, %v1873_v6 }
  0x16   : > { %3834 = vst [vmem:[#allocation10_spill] sm:$0xff] %v1882_v9  ;;  %3835 = vst [vmem:[#allocation11_spill] sm:$0xff] %v1885_v10  ;;  %v1888_v11 = vld [vmem:[%s1852_s16 + $0x58] sm:$0x3]  ;;  %v1897_v14 = vld [vmem:[%s1852_s16 + $0x60] sm:$0xff]  ;;  %v251_v31 = vadd.f32 %v1882_v9, %v1873_v6  ;;  %v252_v32 = vadd.f32 %v1885_v10, %v1876_v7  ;;  %v1989_v48 = vadd.f32 %v246_v17, %v1876_v7 }
  0x17   : > { %3836 = vst [vmem:[#allocation12_spill] sm:$0xff] %v1888_v11  ;;  %3837 = vst [vmem:[#allocation13_spill] sm:$0xff] %v1894_v13  ;;  %v1900_v15 = vld [vmem:[%s1852_s16 + $0x68] sm:$0xff]  ;;  %v1903_v16 = vld [vmem:[%s1852_s16 + $0x70] sm:$0x3]  ;;  %v253_v33 = vadd.f32 %v1888_v11, %v1879_v8  ;;  %v254_v38 = vadd.f32 %v1897_v14, %v1882_v9  ;;  %v1998_v52 = vadd.f32 %v247_v18, %v1879_v8 }
  0x18   : > { %3838 = vst [vmem:[#allocation14_spill] sm:$0xff] %v1897_v14  ;;  %3839 = vst [vmem:[#allocation15_spill] sm:$0xff] %v1900_v15  ;;  %v1918_v21 = vld [vmem:[%s1852_s16 + $0x78] sm:$0xff]  ;;  %v1921_v22 = vld [vmem:[%s1852_s16 + $0x80] sm:$0xff]  ;;  %v255_v39 = vadd.f32 %v1900_v15, %v1885_v10  ;;  %v256_v40 = vadd.f32 %v1903_v16, %v1888_v11  ;;  %v2007_v56 = vadd.f32 %v248_v24, %v1882_v9 }
  0x19   : > { %3840 = vst [vmem:[#allocation16_spill] sm:$0xff] %v1903_v16  ;;  %3841 = vst [vmem:[#allocation17_spill] sm:$0xff] %v1911_v19  ;;  %v1924_v23 = vld [vmem:[%s1852_s16 + $0x88] sm:$0x3]  ;;  %v1937_v28 = vld [vmem:[%s1852_s16 + $0x90] sm:$0xff]  ;;  %v257_v45 = vadd.f32 %v1918_v21, %v1897_v14  ;;  %v258_v46 = vadd.f32 %v1921_v22, %v1900_v15  ;;  %v2023_v60 = vadd.f32 %v249_v25, %v1885_v10  ;;  %v318_v25 = vrot.slane %v1971_v41, 1 }
  0x1a   : > { %3842 = vst [vmem:[#allocation18_spill] sm:$0xff] %v1915_v20  ;;  %3843 = vst [vmem:[#allocation19_spill] sm:$0xff] %v1918_v21  ;;  %v1940_v29 = vld [vmem:[%s1852_s16 + $0x98] sm:$0xff]  ;;  %v1943_v30 = vld [vmem:[%s1852_s16 + $0xa0] sm:$0x3]  ;;  %v259_v47 = vadd.f32 %v1924_v23, %v1903_v16  ;;  %v260_v49 = vadd.f32 %v1937_v28, %v1918_v21  ;;  %v2026_v61 = vadd.f32 %v250_v26, %v1888_v11  ;;  %v319_v26 = vrot.slane %v1989_v48, 1 }
  0x1b   : > { %3844 = vst [vmem:[#allocation20_spill] sm:$0xff] %v1921_v22  ;;  %3845 = vst [vmem:[#allocation21_spill] sm:$0xff] %v1924_v23  ;;  %v1956_v35 = vld [vmem:[%s1852_s16 + $0xa8] sm:$0xff]  ;;  %v1959_v36 = vld [vmem:[%s1852_s16 + $0xb0] sm:$0xff]  ;;  %v261_v50 = vadd.f32 %v1940_v29, %v1921_v22  ;;  %v262_v51 = vadd.f32 %v1943_v30, %v1924_v23  ;;  %v2029_v62 = vadd.f32 %v251_v31, %v1897_v14 }
  0x1c   : > { %3846 = vst [vmem:[#allocation22_spill] sm:$0xff] %v1934_v27  ;;  %3847 = vst [vmem:[#allocation23_spill] sm:$0xff] %v1937_v28  ;;  %v1962_v37 = vld [vmem:[%s1852_s16 + $0xb8] sm:$0x3]  ;;  %v1974_v42 = vld [vmem:[%s1852_s16 + $0xc0] sm:$0xff]  ;;  %v263_v53 = vadd.f32 %v1956_v35, %v1937_v28  ;;  %v264_v54 = vadd.f32 %v1959_v36, %v1940_v29  ;;  %v2032_v63 = vadd.f32 %v252_v32, %v1900_v15 }
  0x1d   : > { %3848 = vst [vmem:[#allocation24_spill] sm:$0xff] %v1940_v29  ;;  %3849 = vst [vmem:[#allocation25_spill] sm:$0xff] %v1943_v30  ;;  %v1977_v43 = vld [vmem:[%s1852_s16 + $0xc8] sm:$0xff]  ;;  %v1980_v44 = vld [vmem:[%s1852_s16 + $0xd0] sm:$0x3]  ;;  %v265_v55 = vadd.f32 %v1962_v37, %v1943_v30  ;;  %v266_v57 = vadd.f32 %v1974_v42, %v1956_v35  ;;  %v2035_v12 = vadd.f32 %v253_v33, %v1903_v16 }
  0x1e   : > { %3850 = vst [vmem:[#allocation26_spill] sm:$0xff] %v1953_v34  ;;  %3851 = vst [vmem:[#allocation27_spill] sm:$0xff] %v1956_v35  ;;  %v267_v58 = vadd.f32 %v1977_v43, %v1959_v36  ;;  %v268_v59 = vadd.f32 %v1980_v44, %v1962_v37  ;;  %v2038_v17 = vld [vmem:[%s1852_s16 + $0xd8] sm:$0xff]  ;;  %v2041_v18 = vadd.f32 %v254_v38, %v1918_v21  ;;  %v2049_v31 = vld [vmem:[%s1852_s16 + $0xe0] sm:$0xff] }
  0x1f   : > { %3852 = vst [vmem:[#allocation28_spill] sm:$0xff] %v1959_v36  ;;  %3853 = vst [vmem:[#allocation29_spill] sm:$0xff] %v1962_v37  ;;  %v2044_v24 = vadd.f32 %v255_v39, %v1921_v22  ;;  %v2052_v32 = vld [vmem:[%s1852_s16 + $0xe8] sm:$0x3]  ;;  %v2055_v33 = vld [vmem:[%s2014_s19] sm:$0xff]  ;;  %v2058_v34 = vadd.f32 %v256_v40, %v1924_v23  ;;  %v2061_v38 = vadd.f32 %v257_v45, %v1937_v28 }
  0x20   : > { %3854 = vst [vmem:[#allocation30_spill] sm:$0xff] %v1974_v42  ;;  %3855 = vst [vmem:[#allocation31_spill] sm:$0xff] %v1977_v43  ;;  %v2064_v39 = vadd.f32 %v258_v46, %v1940_v29  ;;  %v2067_v27 = vadd.f32 %v259_v47, %v1943_v30  ;;  %v2070_v20 = vld [vmem:[%s2014_s19 + $0x8] sm:$0xff]  ;;  %v2073_v19 = vld [vmem:[%s2014_s19 + $0x18] sm:$0xff]  ;;  %v2079_v22 = vadd.f32 %v260_v49, %v1956_v35  ;;  %v321_v46 = vrot.slane %v1998_v52, 1 }
  0x21   : > { %3856 = vst [vmem:[#allocation32_spill] sm:$0xff] %v1980_v44  ;;  %3857 = vst [vmem:[#allocation33_spill] sm:$0xff] %v2038_v17  ;;  %v2076_v13 = vld [vmem:[%s2014_s19 + $0x20] sm:$0xff]  ;;  %v2082_v40 = vadd.f32 %v261_v50, %v1959_v36  ;;  %v2085_v45 = vadd.f32 %v262_v51, %v1962_v37  ;;  %v2089_v29 = vld [vmem:[%s2014_s19 + $0x10] sm:$0x3]  ;;  %v2095_v30 = vadd.f32 %v263_v53, %v1974_v42  ;;  %v323_v49 = vrot.slane %v2007_v56, 1 }
  0x22   : > { %3858 = vst [vmem:[#allocation34_spill] sm:$0xff] %v2049_v31  ;;  %3859 = vst [vmem:[#allocation35_spill] sm:$0xff] %v2052_v32  ;;  %v2092_v47 = vld [vmem:[%s2014_s19 + $0x28] sm:$0x3]  ;;  %v2098_v28 = vadd.f32 %v264_v54, %v1977_v43  ;;  %v324_v50 = vrot.slane %v2023_v60, 1  ;;  %v2103_v36 = vadd.f32 %v265_v55, %v1980_v44  ;;  %v2106_v51 = vadd.f32 %v266_v57, %v2038_v17 }
  0x23   : > { %3860 = vst [vmem:[#allocation36_spill] sm:$0xff] %v2070_v20  ;;  %3861 = vst [vmem:[#allocation37_spill] sm:$0xff] %v2089_v29  ;;  %v2109_v37 = vadd.f32 %v267_v58, %v2049_v31  ;;  %v320_v35 = vsel %vm317_vm0, %v318_v25, %v319_v26  ;;  %v2113_v53 = vadd.f32 %v268_v59, %v2052_v32  ;;  %v326_v54 = vrot.slane %v2026_v61, 1 }
  0x24   : > { %v2118_v43 = vadd.f32 %v2073_v19, %v2055_v33  ;;  %v2122_v55 = vadd.f32 %v2076_v13, %v2070_v20  ;;  %v322_v57 = vsel %vm317_vm0, %v319_v26, %v321_v46  ;;  %v328_v58 = vrot.slane %v2029_v62, 1 }
  0x25   : > { %v329_v31 = vrot.slane %v2032_v63, 1  ;;  %v2129_v59 = vadd.f32 %v2092_v47, %v2089_v29  ;;  %v325_v25 = vsel %vm317_vm0, %v323_v49, %v324_v50  ;;  %v331_v32 = vrot.slane %v2035_v12, 1 }
  0x26   : > { %v333_v17 = vrot.slane %v2041_v18, 1  ;;  %v2135_v44 = vadd.f32 %v320_v35, %v1971_v41  ;;  %v334_v42 = vrot.slane %v2044_v24, 1  ;;  %v336_v26 = vrot.slane %v2058_v34, 1 }
  0x27   : > { %v338_v46 = vrot.slane %v2061_v38, 1  ;;  %v339_v23 = vrot.slane %v2064_v39, 1  ;;  %v341_v21 = vrot.slane %v2067_v27, 1  ;;  %v343_v16 = vrot.slane %v2079_v22, 1 }
  0x28   : > { %v344_v49 = vrot.slane %v2082_v40, 1  ;;  %v346_v15 = vrot.slane %v2085_v45, 1  ;;  %v327_v35 = vsel %vm317_vm0, %v324_v50, %v326_v54  ;;  %v348_v14 = vrot.slane %v2095_v30, 1 }
  0x29   : > { %v349_v11 = vrot.slane %v2098_v28, 1  ;;  %v351_v10 = vrot.slane %v2103_v36, 1  ;;  %v330_v9 = vsel %vm317_vm0, %v328_v58, %v329_v31  ;;  %v353_v8 = vrot.slane %v2106_v51, 1 }
  0x2a   : > { %v354_v7 = vrot.slane %v2109_v37, 1  ;;  %v356_v6 = vrot.slane %v2113_v53, 1  ;;  %v332_v5 = vsel %vm317_vm0, %v329_v31, %v331_v32  ;;  %v335_v4 = vsel %vm317_vm0, %v333_v17, %v334_v42 }
  0x2b   : > { %v337_v50 = vsel %vm317_vm0, %v334_v42, %v336_v26  ;;  %v2157_v54 = vadd.f32 %v322_v57, %v1989_v48  ;;  %v340_v2 = vsel %vm317_vm0, %v338_v46, %v339_v23  ;;  %v342_v29 = vsel %vm317_vm0, %v339_v23, %v341_v21 }
  0x2c   : > { %v345_v58 = vsel %vm317_vm0, %v343_v16, %v344_v49  ;;  %v347_v3 = vsel %vm317_vm0, %v344_v49, %v346_v15  ;;  %v350_v20 = vsel %vm317_vm0, %v348_v14, %v349_v11  ;;  %v352_v1 = vsel %vm317_vm0, %v349_v11, %v351_v10 }
  0x2d   : > { %v376_v31 = vadd.f32 %v325_v25, %v2007_v56  ;;  %v2167_v17 = vadd.f32 %v327_v35, %v2023_v60  ;;  %v355_v42 = vsel %vm317_vm0, %v353_v8, %v354_v7  ;;  %v357_v32 = vsel %vm317_vm0, %v354_v7, %v356_v6 }
  0x2e   : > { %v378_v57 = vadd.f32 %v330_v9, %v2029_v62  ;;  %v379_v21 = vadd.f32 %v332_v5, %v2032_v63  ;;  %v2174_v16 = vadd.f32 %v335_v4, %v2041_v18  ;;  %v2177_v14 = vadd.f32 %v337_v50, %v2044_v24 }
  0x2f   : > { %v391_v10 = vrot.slane %v1971_v41, 2  ;;  %v392_v11 = vrot.slane %v1989_v48, 2  ;;  %v2182_v15 = vadd.f32 %v340_v2, %v2061_v38  ;;  %v2185_v8 = vadd.f32 %v342_v29, %v2064_v39 }
  0x30   : > { %v2188_v6 = vadd.f32 %v345_v58, %v2079_v22  ;;  %v2191_v5 = vadd.f32 %v347_v3, %v2082_v40  ;;  %v2194_v4 = vadd.f32 %v350_v20, %v2095_v30  ;;  %v2197_v7 = vadd.f32 %v352_v1, %v2098_v28 }
  0x31   : > { %v2200_v9 = vadd.f32 %v355_v42, %v2106_v51  ;;  %v2203_v2 = vadd.f32 %v357_v32, %v2109_v37  ;;  %v394_v23 = vrot.slane %v1998_v52, 2  ;;  %v396_v29 = vrot.slane %v2007_v56, 2  ;;  %v2242_v42 = vld [vmem:[%s2014_s19 + $0x30] sm:$0xff]  ;;  %v2245_v32 = vld [vmem:[%s2014_s19 + $0x38] sm:$0xff] }
  0x32   : > { %v397_v41 = vrot.slane %v2023_v60, 2  ;;  %v399_v3 = vrot.slane %v2026_v61, 2  ;;  %v393_v20 = vsel %vm390_vm1, %v391_v10, %v392_v11  ;;  %v401_v48 = vrot.slane %v2029_v62, 2  ;;  %v2248_v10 = vld [vmem:[%s2014_s19 + $0x40] sm:$0x3] }
  0x33   : > { %v402_v1 = vrot.slane %v2032_v63, 2  ;;  %v404_v25 = vrot.slane %v2035_v12, 2  ;;  %v406_v26 = vrot.slane %v2041_v18, 2  ;;  %v407_v46 = vrot.slane %v2044_v24, 2 }
  0x34   : > { %v409_v52 = vrot.slane %v2058_v34, 2  ;;  %v411_v56 = vrot.slane %v2061_v38, 2  ;;  %v412_v60 = vrot.slane %v2064_v39, 2  ;;  %v414_v61 = vrot.slane %v2067_v27, 2 }
  0x35   : > { %v416_v49 = vrot.slane %v2079_v22, 2  ;;  %v417_v62 = vrot.slane %v2082_v40, 2  ;;  %v419_v63 = vrot.slane %v2085_v45, 2  ;;  %v421_v12 = vrot.slane %v2095_v30, 2 }
  0x36   : > { %v422_v18 = vrot.slane %v2098_v28, 2  ;;  %v424_v24 = vrot.slane %v2103_v36, 2  ;;  %v395_v34 = vsel %vm390_vm1, %v392_v11, %v394_v23  ;;  %v398_v38 = vsel %vm390_vm1, %v396_v29, %v397_v41 }
  0x37   : > { %v426_v27 = vrot.slane %v2106_v51, 2  ;;  %v427_v22 = vrot.slane %v2109_v37, 2  ;;  %v400_v39 = vsel %vm390_vm1, %v397_v41, %v399_v3  ;;  %v403_v40 = vsel %vm390_vm1, %v401_v48, %v402_v1  ;;  %v2260_v3 = vld [vmem:[%s2014_s19 + $0x48] sm:$0xff]  ;;  %v2263_v48 = vld [vmem:[%s2014_s19 + $0x50] sm:$0xff] }
  0x38   : > { %v405_v30 = vsel %vm390_vm1, %v402_v1, %v404_v25  ;;  %v429_v28 = vrot.slane %v2113_v53, 2  ;;  %v408_v36 = vsel %vm390_vm1, %v406_v26, %v407_v46  ;;  %v410_v45 = vsel %vm390_vm1, %v407_v46, %v409_v52  ;;  %3865 = vst [vmem:[#allocation41_spill] sm:$0xff] %v2260_v3  ;;  %3866 = vst [vmem:[#allocation42_spill] sm:$0xff] %v2263_v48  ;;  %v2266_v1 = vld [vmem:[%s2014_s19 + $0x58] sm:$0x3] }
  0x39   : > { %v413_v51 = vsel %vm390_vm1, %v411_v56, %v412_v60  ;;  %v415_v35 = vsel %vm390_vm1, %v412_v60, %v414_v61  ;;  %v418_v37 = vsel %vm390_vm1, %v416_v49, %v417_v62  ;;  %v420_v50 = vsel %vm390_vm1, %v417_v62, %v419_v63  ;;  %3867 = vst [vmem:[#allocation43_spill] sm:$0xff] %v2266_v1  ;;  %v2283_v46 = vld [vmem:[%s2014_s19 + $0x70] sm:$0x3]  ;;  %v2301_v60 = vld [vmem:[%s2014_s19 + $0x80] sm:$0xff]  ;;  %v2304_v61 = vld [vmem:[%s2014_s19 + $0x88] sm:$0x3] }
  0x3a   : > { %v423_v58 = vsel %vm390_vm1, %v421_v12, %v422_v18  ;;  %v425_v53 = vsel %vm390_vm1, %v422_v18, %v424_v24  ;;  %v428_v11 = vsel %vm390_vm1, %v426_v27, %v427_v22  ;;  %v2252_v23 = vadd.f32 %v393_v20, %v2135_v44  ;;  %v2280_v20 = vld [vmem:[%s2014_s19 + $0x68] sm:$0xff]  ;;  %3873 = vst [vmem:[#allocation49_spill] sm:$0xff] %v2283_v46  ;;  %v2319_v49 = vld [vmem:[%s2014_s19 + $0x90] sm:$0xff]  ;;  %v2322_v62 = vld [vmem:[%s2014_s19 + $0x98] sm:$0xff] }
  0x3b   : > { %v2255_v29 = vadd.f32 %v395_v34, %v2157_v54  ;;  %v2257_v41 = vadd.f32 %v398_v38, %v376_v31  ;;  %v430_v25 = vsel %vm390_vm1, %v427_v22, %v429_v28  ;;  %v2270_v26 = vadd.f32 %v400_v39, %v2167_v17  ;;  %v2277_v31 = vld [vmem:[%s2014_s19 + $0x60] sm:$0xff]  ;;  %3872 = vst [vmem:[#allocation48_spill] sm:$0xff] %v2280_v20  ;;  %v2338_v12 = vld [vmem:[%s2014_s19 + $0xa8] sm:$0xff]  ;;  %v2341_v18 = vld [vmem:[%s2014_s19 + $0xb0] sm:$0xff] }
  0x3c   : > { %3862 = vst [vmem:[#allocation38_spill] sm:$0xff] %v2252_v23  ;;  %v2272_v44 = vadd.f32 %v403_v40, %v378_v57  ;;  %v2274_v54 = vadd.f32 %v405_v30, %v379_v21  ;;  %3871 = vst [vmem:[#allocation47_spill] sm:$0xff] %v2277_v31  ;;  %v2286_v52 = vadd.f32 %v408_v36, %v2174_v16  ;;  %v2298_v21 = vld [vmem:[%s2014_s19 + $0x78] sm:$0xff]  ;;  %v2325_v63 = vld [vmem:[%s2014_s19 + $0xa0] sm:$0x3] }
  0x3d   : > { %3863 = vst [vmem:[#allocation39_spill] sm:$0xff] %v2255_v29  ;;  %3864 = vst [vmem:[#allocation40_spill] sm:$0xff] %v2257_v41  ;;  %v2289_v56 = vadd.f32 %v410_v45, %v2177_v14  ;;  %v2292_v17 = vadd.f32 %v413_v51, %v2182_v15  ;;  %v2295_v57 = vadd.f32 %v415_v35, %v2185_v8  ;;  %v2344_v24 = vld [vmem:[%s2014_s19 + $0xb8] sm:$0x3]  ;;  %v2355_v27 = vld [vmem:[%s2014_s19 + $0xc0] sm:$0xff] }
  0x3e   : > { %3868 = vst [vmem:[#allocation44_spill] sm:$0xff] %v2270_v26  ;;  %3869 = vst [vmem:[#allocation45_spill] sm:$0xff] %v2272_v44  ;;  %v2307_v16 = vadd.f32 %v418_v37, %v2188_v6  ;;  %v2310_v14 = vadd.f32 %v420_v50, %v2191_v5  ;;  %v2313_v15 = vadd.f32 %v423_v58, %v2194_v4  ;;  %v2358_v22 = vld [vmem:[%s2014_s19 + $0xc8] sm:$0xff]  ;;  %v2369_v36 = vld [vmem:[%s2014_s19 + $0xd0] sm:$0x3] }
  0x3f   : > { %3870 = vst [vmem:[#allocation46_spill] sm:$0xff] %v2274_v54  ;;  %3874 = vst [vmem:[#allocation50_spill] sm:$0xff] %v2286_v52  ;;  %v2316_v8 = vadd.f32 %v425_v53, %v2197_v7  ;;  %v2328_v6 = vadd.f32 %v428_v11, %v2200_v9  ;;  %v2331_v5 = vadd.f32 %v430_v25, %v2203_v2  ;;  %v2427_v52 = vld [vmem:[%s2014_s19 + $0xe0] sm:$0xff] }
  0x40   : > { %3875 = vst [vmem:[#allocation51_spill] sm:$0xff] %v2289_v56  ;;  %3876 = vst [vmem:[#allocation52_spill] sm:$0xff] %v2292_v17  ;;  %v466_v4 = vadd.f32 %v2242_v42, %v2073_v19  ;;  %v467_v7 = vadd.f32 %v2245_v32, %v2076_v13  ;;  %v468_v9 = vadd.f32 %v2248_v10, %v2092_v47 }
  0x41   : > { %3877 = vst [vmem:[#allocation53_spill] sm:$0xff] %v2295_v57  ;;  %3878 = vst [vmem:[#allocation54_spill] sm:$0xff] %v2298_v21  ;;  %v469_v2 = vadd.f32 %v2260_v3, %v2242_v42  ;;  %v470_v34 = vadd.f32 %v2263_v48, %v2245_v32  ;;  %v471_v38 = vadd.f32 %v2266_v1, %v2248_v10 }
  0x42   : > { %3879 = vst [vmem:[#allocation55_spill] sm:$0xff] %v2301_v60  ;;  %3880 = vst [vmem:[#allocation56_spill] sm:$0xff] %v2304_v61  ;;  %v472_v39 = vadd.f32 %v2277_v31, %v2260_v3  ;;  %v473_v40 = vadd.f32 %v2280_v20, %v2263_v48  ;;  %v474_v30 = vadd.f32 %v2283_v46, %v2266_v1 }
  0x43   : > { %3881 = vst [vmem:[#allocation57_spill] sm:$0xff] %v2307_v16  ;;  %3882 = vst [vmem:[#allocation58_spill] sm:$0xff] %v2310_v14  ;;  %v475_v28 = vadd.f32 %v2298_v21, %v2277_v31  ;;  %v476_v45 = vadd.f32 %v2301_v60, %v2280_v20  ;;  %v477_v51 = vadd.f32 %v2304_v61, %v2283_v46 }
  0x44   : > { %3883 = vst [vmem:[#allocation59_spill] sm:$0xff] %v2313_v15  ;;  %3884 = vst [vmem:[#allocation60_spill] sm:$0xff] %v2316_v8  ;;  %v478_v35 = vadd.f32 %v2319_v49, %v2298_v21  ;;  %v479_v37 = vadd.f32 %v2322_v62, %v2301_v60  ;;  %v480_v50 = vadd.f32 %v2325_v63, %v2304_v61 }
  0x45   : > { %3885 = vst [vmem:[#allocation61_spill] sm:$0xff] %v2319_v49  ;;  %3886 = vst [vmem:[#allocation62_spill] sm:$0xff] %v2322_v62  ;;  %v481_v58 = vadd.f32 %v2338_v12, %v2319_v49  ;;  %v482_v53 = vadd.f32 %v2341_v18, %v2322_v62  ;;  %v483_v11 = vadd.f32 %v2344_v24, %v2325_v63 }
  0x46   : > { %3887 = vst [vmem:[#allocation63_spill] sm:$0xff] %v2325_v63  ;;  %3888 = vst [vmem:[#allocation64_spill] sm:$0xff] %v2328_v6  ;;  %v484_v25 = vadd.f32 %v2355_v27, %v2338_v12  ;;  %v2393_v6 = vadd.f32 %v2118_v43, %v2242_v42  ;;  %v2397_v8 = vadd.f32 %v2122_v55, %v2245_v32 }
  0x47   : > { %3889 = vst [vmem:[#allocation65_spill] sm:$0xff] %v2331_v5  ;;  %3890 = vst [vmem:[#allocation66_spill] sm:$0xff] %v2338_v12  ;;  %v485_v5 = vadd.f32 %v2358_v22, %v2341_v18  ;;  %v486_v15 = vadd.f32 %v2369_v36, %v2344_v24  ;;  %v2403_v14 = vadd.f32 %v2129_v59, %v2248_v10  ;;  %v2424_v59 = vld [vmem:[%s2014_s19 + $0xd8] sm:$0xff] }
  0x48   : > { %3891 = vst [vmem:[#allocation67_spill] sm:$0xff] %v2341_v18  ;;  %3892 = vst [vmem:[#allocation68_spill] sm:$0xff] %v2344_v24  ;;  %v2406_v16 = vadd.f32 %v466_v4, %v2260_v3  ;;  %v2409_v57 = vadd.f32 %v467_v7, %v2263_v48  ;;  %v2412_v43 = vadd.f32 %v468_v9, %v2266_v1  ;;  %v536_v44 = vrot.slane %v2397_v8, 1 }
  0x49   : > { %3893 = vst [vmem:[#allocation69_spill] sm:$0xff] %v2355_v27  ;;  %3894 = vst [vmem:[#allocation70_spill] sm:$0xff] %v2358_v22  ;;  %v2415_v17 = vadd.f32 %v469_v2, %v2277_v31  ;;  %v2418_v55 = vadd.f32 %v470_v34, %v2280_v20  ;;  %v2421_v56 = vadd.f32 %v471_v38, %v2283_v46  ;;  %v2442_v34 = vld [vmem:[%s2014_s19 + $0xe8] sm:$0x3] }
  0x4a   : > { %3895 = vst [vmem:[#allocation71_spill] sm:$0xff] %v2369_v36  ;;  %3896 = vst [vmem:[#allocation72_spill] sm:$0xff] %v2424_v59  ;;  %v2430_v4 = vadd.f32 %v472_v39, %v2298_v21  ;;  %v2433_v7 = vadd.f32 %v473_v40, %v2301_v60  ;;  %v2436_v9 = vadd.f32 %v474_v30, %v2304_v61  ;;  %v535_v39 = vrot.slane %v2393_v6, 1 }
  0x4b   : > { %3897 = vst [vmem:[#allocation73_spill] sm:$0xff] %v2427_v52  ;;  %v2439_v2 = vadd.f32 %v475_v28, %v2319_v49  ;;  %3898 = vst [vmem:[#allocation74_spill] sm:$0xff] %v2442_v34  ;;  %v2445_v38 = vadd.f32 %v476_v45, %v2322_v62  ;;  %v2448_v54 = vadd.f32 %v477_v51, %v2325_v63  ;;  %v541_v29 = vrot.slane %v2409_v57, 1 }
  0x4c   : > { %v2453_v40 = vadd.f32 %v478_v35, %v2338_v12  ;;  %v2456_v30 = vadd.f32 %v479_v37, %v2341_v18  ;;  %v2459_v28 = vadd.f32 %v480_v50, %v2344_v24  ;;  %v2462_v26 = vadd.f32 %v481_v58, %v2355_v27 }
  0x4d   : > { %v2465_v45 = vadd.f32 %v482_v53, %v2358_v22  ;;  %v2468_v51 = vadd.f32 %v483_v11, %v2369_v36  ;;  %v2471_v41 = vadd.f32 %v484_v25, %v2424_v59  ;;  %v2474_v35 = vadd.f32 %v485_v5, %v2427_v52 }
  0x4e   : > { %v2477_v37 = vadd.f32 %v486_v15, %v2442_v34  ;;  %v538_v50 = vrot.slane %v2403_v14, 1  ;;  %v540_v58 = vrot.slane %v2406_v16, 1  ;;  %v537_v53 = vsel %vm317_vm0, %v535_v39, %v536_v44 }
  0x4f   : > { %v543_v11 = vrot.slane %v2412_v43, 1  ;;  %v545_v23 = vrot.slane %v2415_v17, 1  ;;  %v546_v25 = vrot.slane %v2418_v55, 1  ;;  %v548_v5 = vrot.slane %v2421_v56, 1 }
  0x50   : > { %v550_v52 = vrot.slane %v2430_v4, 1  ;;  %v551_v15 = vrot.slane %v2433_v7, 1  ;;  %v553_v34 = vrot.slane %v2436_v9, 1  ;;  %v555_v59 = vrot.slane %v2439_v2, 1 }
  0x51   : > { %v556_v36 = vrot.slane %v2445_v38, 1  ;;  %v558_v39 = vrot.slane %v2448_v54, 1  ;;  %v560_v22 = vrot.slane %v2453_v40, 1  ;;  %v561_v27 = vrot.slane %v2456_v30, 1 }
  0x52   : > { %v563_v24 = vrot.slane %v2459_v28, 1  ;;  %v565_v18 = vrot.slane %v2462_v26, 1  ;;  %v566_v12 = vrot.slane %v2465_v45, 1  ;;  %v539_v63 = vsel %vm317_vm0, %v536_v44, %v538_v50 }
  0x53   : > { %v542_v62 = vsel %vm317_vm0, %v540_v58, %v541_v29  ;;  %v544_v49 = vsel %vm317_vm0, %v541_v29, %v543_v11  ;;  %v568_v61 = vrot.slane %v2468_v51, 1  ;;  %v547_v60 = vsel %vm317_vm0, %v545_v23, %v546_v25 }
  0x54   : > { %v570_v21 = vrot.slane %v2471_v41, 1  ;;  %v571_v46 = vrot.slane %v2474_v35, 1  ;;  %v573_v20 = vrot.slane %v2477_v37, 1  ;;  %v549_v31 = vsel %vm317_vm0, %v546_v25, %v548_v5 }
  0x55   : > { %v552_v1 = vsel %vm317_vm0, %v550_v52, %v551_v15  ;;  %v554_v44 = vsel %vm317_vm0, %v551_v15, %v553_v34  ;;  %v557_v50 = vsel %vm317_vm0, %v555_v59, %v556_v36  ;;  %v559_v29 = vsel %vm317_vm0, %v556_v36, %v558_v39 }
  0x56   : > { %v562_v58 = vsel %vm317_vm0, %v560_v22, %v561_v27  ;;  %v564_v23 = vsel %vm317_vm0, %v561_v27, %v563_v24  ;;  %v567_v11 = vsel %vm317_vm0, %v565_v18, %v566_v12  ;;  %v569_v48 = vsel %vm317_vm0, %v566_v12, %v568_v61 }
  0x57   : > { %v591_v3 = vadd.f32 %v537_v53, %v2393_v6  ;;  %v592_v25 = vadd.f32 %v539_v63, %v2397_v8  ;;  %v593_v52 = vadd.f32 %v542_v62, %v2406_v16  ;;  %v572_v34 = vsel %vm317_vm0, %v570_v21, %v571_v46 }
  0x58   : > { %v574_v59 = vsel %vm317_vm0, %v571_v46, %v573_v20  ;;  %v594_v36 = vadd.f32 %v544_v49, %v2409_v57  ;;  %v595_v22 = vadd.f32 %v547_v60, %v2415_v17  ;;  %v596_v24 = vadd.f32 %v549_v31, %v2418_v55 }
  0x59   : > { %v597_v18 = vadd.f32 %v552_v1, %v2430_v4  ;;  %v607_v61 = vrot.slane %v2393_v6, 2  ;;  %v608_v12 = vrot.slane %v2397_v8, 2  ;;  %v598_v63 = vadd.f32 %v554_v44, %v2433_v7 }
  0x5a   : > { %v599_v62 = vadd.f32 %v557_v50, %v2439_v2  ;;  %v600_v21 = vadd.f32 %v559_v29, %v2445_v38  ;;  %v601_v20 = vadd.f32 %v562_v58, %v2453_v40  ;;  %v602_v46 = vadd.f32 %v564_v23, %v2456_v30 }
  0x5b   : > { %v603_v60 = vadd.f32 %v567_v11, %v2462_v26  ;;  %v604_v31 = vadd.f32 %v569_v48, %v2465_v45  ;;  %v605_v1 = vadd.f32 %v572_v34, %v2471_v41  ;;  %v606_v49 = vadd.f32 %v574_v59, %v2474_v35 }
  0x5c   : > { %v610_v8 = vrot.slane %v2403_v14, 2  ;;  %v612_v6 = vrot.slane %v2406_v16, 2  ;;  %v613_v27 = vrot.slane %v2409_v57, 2  ;;  %v609_v53 = vsel %vm390_vm1, %v607_v61, %v608_v12 }
  0x5d   : > { %v615_v5 = vrot.slane %v2412_v43, 2  ;;  %v617_v15 = vrot.slane %v2415_v17, 2  ;;  %v618_v39 = vrot.slane %v2418_v55, 2  ;;  %v620_v48 = vrot.slane %v2421_v56, 2 }
  0x5e   : > { %v622_v44 = vrot.slane %v2430_v4, 2  ;;  %v623_v50 = vrot.slane %v2433_v7, 2  ;;  %v625_v14 = vrot.slane %v2436_v9, 2  ;;  %v627_v16 = vrot.slane %v2439_v2, 2 }
  0x5f   : > { %v628_v57 = vrot.slane %v2445_v38, 2  ;;  %v630_v29 = vrot.slane %v2448_v54, 2  ;;  %v632_v43 = vrot.slane %v2453_v40, 2  ;;  %v633_v17 = vrot.slane %v2456_v30, 2 }
  0x60   : > { %v635_v55 = vrot.slane %v2459_v28, 2  ;;  %v637_v56 = vrot.slane %v2462_v26, 2  ;;  %v638_v4 = vrot.slane %v2465_v45, 2  ;;  %v611_v7 = vsel %vm390_vm1, %v608_v12, %v610_v8 }
  0x61   : > { %v614_v9 = vsel %vm390_vm1, %v612_v6, %v613_v27  ;;  %v616_v2 = vsel %vm390_vm1, %v613_v27, %v615_v5  ;;  %v640_v38 = vrot.slane %v2468_v51, 2  ;;  %v619_v54 = vsel %vm390_vm1, %v617_v15, %v618_v39 }
  0x62   : > { %v642_v40 = vrot.slane %v2471_v41, 2  ;;  %v643_v30 = vrot.slane %v2474_v35, 2  ;;  %v645_v28 = vrot.slane %v2477_v37, 2  ;;  %v621_v26 = vsel %vm390_vm1, %v618_v39, %v620_v48 }
  0x63   : > { %v624_v45 = vsel %vm390_vm1, %v622_v44, %v623_v50  ;;  %v626_v58 = vsel %vm390_vm1, %v623_v50, %v625_v14  ;;  %v629_v23 = vsel %vm390_vm1, %v627_v16, %v628_v57  ;;  %v631_v11 = vsel %vm390_vm1, %v628_v57, %v630_v29  ;;  %v3918_v50 = vld [vmem:[#allocation37_spill] sm:$0xff]  ;;  %v3919_v14 = vld [vmem:[#allocation3_spill] sm:$0xff]  ;;  %v3921_v16 = vld [vmem:[#allocation6_spill] sm:$0xff] }
  0x64   : > { %v634_v51 = vsel %vm390_vm1, %v632_v43, %v633_v17  ;;  %v636_v34 = vsel %vm390_vm1, %v633_v17, %v635_v55  ;;  %v639_v41 = vsel %vm390_vm1, %v637_v56, %v638_v4  ;;  %v641_v35 = vsel %vm390_vm1, %v638_v4, %v640_v38  ;;  %v3923_v29 = vld [vmem:[#allocation8_spill] sm:$0xff]  ;;  %v3925_v17 = vld [vmem:[#allocation10_spill] sm:$0xff]  ;;  %v3926_v55 = vld [vmem:[#allocation41_spill] sm:$0xff] }
  0x65   : > { %v2571_v59 = vadd.f32 %v609_v53, %v591_v3  ;;  %v2573_v37 = vadd.f32 %v611_v7, %v592_v25  ;;  %v2575_v61 = vadd.f32 %v614_v9, %v593_v52  ;;  %v644_v12 = vsel %vm390_vm1, %v642_v40, %v643_v30  ;;  %v3927_v4 = vld [vmem:[#allocation11_spill] sm:$0xff]  ;;  %v3929_v9 = vld [vmem:[#allocation12_spill] sm:$0xff]  ;;  %v3931_v38 = vld [vmem:[#allocation14_spill] sm:$0xff] }
  0x66   : > { %v646_v8 = vsel %vm390_vm1, %v643_v30, %v645_v28  ;;  %v2579_v6 = vadd.f32 %v616_v2, %v594_v36  ;;  %v2581_v27 = vadd.f32 %v619_v54, %v595_v22  ;;  %v2583_v5 = vadd.f32 %v621_v26, %v596_v24  ;;  %v3933_v40 = vld [vmem:[#allocation15_spill] sm:$0xff]  ;;  %v3934_v30 = vld [vmem:[#allocation48_spill] sm:$0xff] }
  0x67   : > { %3899 = vst [vmem:[#allocation75_spill] sm:$0xff] %v2571_v59  ;;  %3900 = vst [vmem:[#allocation76_spill] sm:$0xff] %v2573_v37  ;;  %v2585_v15 = vadd.f32 %v624_v45, %v597_v18  ;;  %v2587_v39 = vadd.f32 %v626_v58, %v598_v63  ;;  %v2589_v3 = vadd.f32 %v629_v23, %v599_v62  ;;  %v3915_v63 = vld [vmem:[#allocation2_spill] sm:$0xff]  ;;  %v3916_v62 = vld [vmem:[#allocation36_spill] sm:$0xff] }
  0x68   : > { %3901 = vst [vmem:[#allocation77_spill] sm:$0xff] %v2575_v61  ;;  %3902 = vst [vmem:[#allocation78_spill] sm:$0xff] %v2579_v6  ;;  %v2591_v25 = vadd.f32 %v631_v11, %v600_v21  ;;  %v2593_v52 = vadd.f32 %v634_v51, %v601_v20  ;;  %v2595_v53 = vadd.f32 %v636_v34, %v602_v46  ;;  %v3917_v21 = vld [vmem:[#allocation4_spill] sm:$0xff]  ;;  %v3936_v45 = vld [vmem:[#allocation49_spill] sm:$0xff] }
  0x69   : > { %3903 = vst [vmem:[#allocation79_spill] sm:$0xff] %v2581_v27  ;;  %3904 = vst [vmem:[#allocation80_spill] sm:$0xff] %v2583_v5  ;;  %v2597_v48 = vadd.f32 %v639_v41, %v603_v60  ;;  %v2599_v36 = vadd.f32 %v641_v35, %v604_v31  ;;  %v2601_v22 = vadd.f32 %v644_v12, %v605_v1  ;;  %v3920_v60 = vld [vmem:[#allocation5_spill] sm:$0xff]  ;;  %v3935_v26 = vld [vmem:[#allocation16_spill] sm:$0xff] }
  0x6a   : > { %3905 = vst [vmem:[#allocation81_spill] sm:$0xff] %v2585_v15  ;;  %3906 = vst [vmem:[#allocation82_spill] sm:$0xff] %v2587_v39  ;;  %v2603_v24 = vadd.f32 %v646_v8, %v606_v49  ;;  %v679_v18 = vmul.f32 %v2055_v33, %v1855_v0  ;;  %v680_v44 = vmul.f32 %v3916_v62, %v3915_v63  ;;  %v3922_v49 = vld [vmem:[#allocation7_spill] sm:$0xff]  ;;  %v3924_v33 = vld [vmem:[#allocation9_spill] sm:$0xff] }
  0x6b   : > { %3907 = vst [vmem:[#allocation83_spill] sm:$0xff] %v2589_v3  ;;  %3908 = vst [vmem:[#allocation84_spill] sm:$0xff] %v2591_v25  ;;  %v681_v20 = vmul.f32 %v3918_v50, %v3917_v21  ;;  %v682_v46 = vmul.f32 %v2073_v19, %v3919_v14  ;;  %v683_v31 = vmul.f32 %v2076_v13, %v3920_v60  ;;  %v3928_v19 = vld [vmem:[#allocation42_spill] sm:$0xff]  ;;  %v3930_v13 = vld [vmem:[#allocation43_spill] sm:$0xff] }
  0x6c   : > { %3909 = vst [vmem:[#allocation85_spill] sm:$0xff] %v2593_v52  ;;  %3910 = vst [vmem:[#allocation86_spill] sm:$0xff] %v2595_v53  ;;  %v684_v1 = vmul.f32 %v2092_v47, %v3921_v16  ;;  %v685_v57 = vmul.f32 %v2242_v42, %v3922_v49  ;;  %v686_v0 = vmul.f32 %v2245_v32, %v3923_v29  ;;  %v3932_v47 = vld [vmem:[#allocation47_spill] sm:$0xff]  ;;  %v3938_v11 = vld [vmem:[#allocation54_spill] sm:$0xff] }
  0x6d   : > { %3911 = vst [vmem:[#allocation87_spill] sm:$0xff] %v2597_v48  ;;  %3912 = vst [vmem:[#allocation88_spill] sm:$0xff] %v2599_v36  ;;  %v687_v43 = vmul.f32 %v2248_v10, %v3924_v33  ;;  %v688_v56 = vmul.f32 %v3926_v55, %v3925_v17  ;;  %v689_v7 = vmul.f32 %v3928_v19, %v3927_v4  ;;  %v3937_v23 = vld [vmem:[#allocation19_spill] sm:$0xff]  ;;  %v3939_v34 = vld [vmem:[#allocation20_spill] sm:$0xff] }
  0x6e   : > { %3913 = vst [vmem:[#allocation89_spill] sm:$0xff] %v2601_v22  ;;  %3914 = vst [vmem:[#allocation90_spill] sm:$0xff] %v2603_v24  ;;  %v690_v2 = vmul.f32 %v3930_v13, %v3929_v9  ;;  %v691_v54 = vmul.f32 %v3932_v47, %v3931_v38  ;;  %v692_v28 = vmul.f32 %v3934_v30, %v3933_v40  ;;  %v3940_v41 = vld [vmem:[#allocation55_spill] sm:$0xff]  ;;  %v3941_v12 = vld [vmem:[#allocation21_spill] sm:$0xff] }
  0x6f   : > { %v693_v58 = vmul.f32 %v3936_v45, %v3935_v26  ;;  %v694_v51 = vmul.f32 %v3938_v11, %v3937_v23  ;;  %v695_v35 = vmul.f32 %v3940_v41, %v3939_v34  ;;  %v3942_v8 = vld [vmem:[#allocation56_spill] sm:$0xff]  ;;  %v3943_v62 = vld [vmem:[#allocation23_spill] sm:$0xff]  ;;  %v3944_v21 = vld [vmem:[#allocation61_spill] sm:$0xff]  ;;  %v709_v61 = vadd.f32 %v682_v46, %v679_v18 }
  0x70   : > { %v696_v63 = vmul.f32 %v3942_v8, %v3941_v12  ;;  %v697_v50 = vmul.f32 %v3944_v21, %v3943_v62  ;;  %v3945_v14 = vld [vmem:[#allocation24_spill] sm:$0xff]  ;;  %v3946_v60 = vld [vmem:[#allocation62_spill] sm:$0xff]  ;;  %v3947_v49 = vld [vmem:[#allocation25_spill] sm:$0xff]  ;;  %v711_v37 = vadd.f32 %v684_v1, %v681_v20  ;;  %v712_v59 = vadd.f32 %v685_v57, %v682_v46 }
  0x71   : > { %v698_v16 = vmul.f32 %v3946_v60, %v3945_v14  ;;  %v3948_v29 = vld [vmem:[#allocation63_spill] sm:$0xff]  ;;  %v3950_v4 = vld [vmem:[#allocation66_spill] sm:$0xff]  ;;  %v3951_v38 = vld [vmem:[#allocation28_spill] sm:$0xff] }
  0x72   : > { %v699_v33 = vmul.f32 %v3948_v29, %v3947_v49  ;;  %v3949_v17 = vld [vmem:[#allocation27_spill] sm:$0xff]  ;;  %v3953_v23 = vld [vmem:[#allocation29_spill] sm:$0xff]  ;;  %v3954_v34 = vld [vmem:[#allocation68_spill] sm:$0xff]  ;;  %v724_v29 = vadd.f32 %v697_v50, %v694_v51  ;;  %v2671_v21 = vadd.f32 %v712_v59, %v688_v56 }
  0x73   : > { %v700_v9 = vmul.f32 %v3950_v4, %v3949_v17  ;;  %v3952_v40 = vld [vmem:[#allocation67_spill] sm:$0xff]  ;;  %v702_v24 = vmul.f32 %v3954_v34, %v3953_v23  ;;  %v3955_v22 = vld [vmem:[#allocation30_spill] sm:$0xff]  ;;  %v3956_v12 = vld [vmem:[#allocation69_spill] sm:$0xff]  ;;  %v710_v23 = vadd.f32 %v683_v31, %v680_v44  ;;  %v715_v34 = vadd.f32 %v688_v56, %v685_v57 }
  0x74   : > { %v701_v26 = vmul.f32 %v3952_v40, %v3951_v38  ;;  %v703_v36 = vmul.f32 %v3956_v12, %v3955_v22  ;;  %v3957_v48 = vld [vmem:[#allocation31_spill] sm:$0xff]  ;;  %v3958_v62 = vld [vmem:[#allocation70_spill] sm:$0xff]  ;;  %v3959_v52 = vld [vmem:[#allocation32_spill] sm:$0xff]  ;;  %v713_v22 = vadd.f32 %v686_v0, %v683_v31  ;;  %v714_v12 = vadd.f32 %v687_v43, %v684_v1 }
  0x75   : > { %v704_v53 = vmul.f32 %v3958_v62, %v3957_v48  ;;  %v3960_v14 = vld [vmem:[#allocation71_spill] sm:$0xff]  ;;  %v3961_v3 = vld [vmem:[#allocation33_spill] sm:$0xff]  ;;  %v3962_v49 = vld [vmem:[#allocation72_spill] sm:$0xff]  ;;  %v716_v48 = vadd.f32 %v689_v7, %v686_v0  ;;  %v717_v62 = vadd.f32 %v690_v2, %v687_v43  ;;  %v718_v40 = vadd.f32 %v691_v54, %v688_v56 }
  0x76   : > { %v705_v25 = vmul.f32 %v3960_v14, %v3959_v52  ;;  %v706_v39 = vmul.f32 %v3962_v49, %v3961_v3  ;;  %v3963_v15 = vld [vmem:[#allocation34_spill] sm:$0xff]  ;;  %v3964_v17 = vld [vmem:[#allocation73_spill] sm:$0xff]  ;;  %v3965_v27 = vld [vmem:[#allocation35_spill] sm:$0xff]  ;;  %v719_v52 = vadd.f32 %v692_v28, %v689_v7  ;;  %v720_v14 = vadd.f32 %v693_v58, %v690_v2 }
  0x77   : > { %v707_v5 = vmul.f32 %v3964_v17, %v3963_v15  ;;  %v3966_v38 = vld [vmem:[#allocation74_spill] sm:$0xff]  ;;  %v721_v4 = vadd.f32 %v694_v51, %v691_v54  ;;  %v722_v3 = vadd.f32 %v695_v35, %v692_v28  ;;  %v723_v49 = vadd.f32 %v696_v63, %v693_v58 }
  0x78   : > { %v708_v6 = vmul.f32 %v3966_v38, %v3965_v27  ;;  %v725_v15 = vadd.f32 %v698_v16, %v695_v35  ;;  %v726_v17 = vadd.f32 %v699_v33, %v696_v63  ;;  %v727_v60 = vadd.f32 %v700_v9, %v697_v50 }
  0x79   : > { %v728_v27 = vadd.f32 %v701_v26, %v698_v16  ;;  %v729_v18 = vadd.f32 %v702_v24, %v699_v33  ;;  %v730_v44 = vadd.f32 %v703_v36, %v700_v9  ;;  %v731_v20 = vadd.f32 %v704_v53, %v701_v26 }
  0x7a   : > { %v732_v46 = vadd.f32 %v705_v25, %v702_v24  ;;  %v2665_v31 = vadd.f32 %v709_v61, %v685_v57  ;;  %v2667_v1 = vadd.f32 %v710_v23, %v686_v0  ;;  %v2669_v38 = vadd.f32 %v711_v37, %v687_v43 }
  0x7b   : > { %v2673_v8 = vadd.f32 %v713_v22, %v689_v7  ;;  %v2675_v41 = vadd.f32 %v714_v12, %v690_v2  ;;  %v2677_v11 = vadd.f32 %v715_v34, %v691_v54  ;;  %v2679_v45 = vadd.f32 %v716_v48, %v692_v28 }
  0x7c   : > { %v2681_v30 = vadd.f32 %v717_v62, %v693_v58  ;;  %v2683_v47 = vadd.f32 %v718_v40, %v694_v51  ;;  %v2685_v61 = vadd.f32 %v719_v52, %v695_v35  ;;  %v2687_v57 = vadd.f32 %v720_v14, %v696_v63 }
  0x7d   : > { %v2689_v37 = vadd.f32 %v721_v4, %v697_v50  ;;  %v2691_v59 = vadd.f32 %v722_v3, %v698_v16  ;;  %v2693_v0 = vadd.f32 %v723_v49, %v699_v33  ;;  %v2695_v43 = vadd.f32 %v724_v29, %v700_v9 }
  0x7e   : > { %v781_v56 = vrot.slane %v2665_v31, 1  ;;  %v782_v7 = vrot.slane %v2667_v1, 1  ;;  %v784_v2 = vrot.slane %v2669_v38, 1  ;;  %v2700_v54 = vadd.f32 %v725_v15, %v701_v26 }
  0x7f   : > { %v2702_v28 = vadd.f32 %v726_v17, %v702_v24  ;;  %v2704_v58 = vadd.f32 %v727_v60, %v703_v36  ;;  %v2706_v51 = vadd.f32 %v728_v27, %v704_v53  ;;  %v2708_v35 = vadd.f32 %v729_v18, %v705_v25 }
  0x80   : > { %v2710_v63 = vadd.f32 %v730_v44, %v706_v39  ;;  %v2712_v50 = vadd.f32 %v731_v20, %v707_v5  ;;  %v2714_v16 = vadd.f32 %v732_v46, %v708_v6  ;;  %v786_v29 = vrot.slane %v2671_v21, 1 }
  0x81   : > { %v787_v33 = vrot.slane %v2673_v8, 1  ;;  %v789_v4 = vrot.slane %v2675_v41, 1  ;;  %v791_v24 = vrot.slane %v2677_v11, 1  ;;  %v783_v36 = vsel %vm317_vm0, %v781_v56, %v782_v7 }
  0x82   : > { %v785_v53 = vsel %vm317_vm0, %v782_v7, %v784_v2  ;;  %v792_v25 = vrot.slane %v2679_v45, 1  ;;  %v794_v39 = vrot.slane %v2681_v30, 1  ;;  %v796_v5 = vrot.slane %v2683_v47, 1 }
  0x83   : > { %v797_v6 = vrot.slane %v2685_v61, 1  ;;  %v799_v60 = vrot.slane %v2687_v57, 1  ;;  %v801_v9 = vrot.slane %v2689_v37, 1  ;;  %v802_v40 = vrot.slane %v2691_v59, 1 }
  0x84   : > { %v804_v26 = vrot.slane %v2693_v0, 1  ;;  %v806_v34 = vrot.slane %v2695_v43, 1  ;;  %v807_v12 = vrot.slane %v2700_v54, 1  ;;  %v809_v62 = vrot.slane %v2702_v28, 1 }
  0x85   : > { %v811_v14 = vrot.slane %v2704_v58, 1  ;;  %v812_v49 = vrot.slane %v2706_v51, 1  ;;  %v814_v17 = vrot.slane %v2708_v35, 1  ;;  %v788_v23 = vsel %vm317_vm0, %v786_v29, %v787_v33 }
  0x86   : > { %v816_v22 = vrot.slane %v2710_v63, 1  ;;  %v817_v48 = vrot.slane %v2712_v50, 1  ;;  %v819_v52 = vrot.slane %v2714_v16, 1  ;;  %v790_v3 = vsel %vm317_vm0, %v787_v33, %v789_v4 }
  0x87   : > { %v793_v15 = vsel %vm317_vm0, %v791_v24, %v792_v25  ;;  %v795_v27 = vsel %vm317_vm0, %v792_v25, %v794_v39  ;;  %v798_v18 = vsel %vm317_vm0, %v796_v5, %v797_v6  ;;  %v800_v44 = vsel %vm317_vm0, %v797_v6, %v799_v60 }
  0x88   : > { %v803_v20 = vsel %vm317_vm0, %v801_v9, %v802_v40  ;;  %v805_v46 = vsel %vm317_vm0, %v802_v40, %v804_v26  ;;  %v808_v56 = vsel %vm317_vm0, %v806_v34, %v807_v12  ;;  %v810_v7 = vsel %vm317_vm0, %v807_v12, %v809_v62 }
  0x89   : > { %v813_v2 = vsel %vm317_vm0, %v811_v14, %v812_v49  ;;  %v815_v29 = vsel %vm317_vm0, %v812_v49, %v814_v17  ;;  %v837_v33 = vadd.f32 %v783_v36, %v2665_v31  ;;  %v818_v4 = vsel %vm317_vm0, %v816_v22, %v817_v48 }
  0x8a   : > { %v820_v24 = vsel %vm317_vm0, %v817_v48, %v819_v52  ;;  %v838_v25 = vadd.f32 %v785_v53, %v2667_v1  ;;  %v839_v39 = vadd.f32 %v788_v23, %v2671_v21  ;;  %v840_v5 = vadd.f32 %v790_v3, %v2673_v8 }
  0x8b   : > { %v841_v6 = vadd.f32 %v793_v15, %v2677_v11  ;;  %v842_v60 = vadd.f32 %v795_v27, %v2679_v45  ;;  %v843_v9 = vadd.f32 %v798_v18, %v2683_v47  ;;  %v844_v40 = vadd.f32 %v800_v44, %v2685_v61 }
  0x8c   : > { %v853_v36 = vrot.slane %v2665_v31, 2  ;;  %v854_v26 = vrot.slane %v2667_v1, 2  ;;  %v856_v34 = vrot.slane %v2669_v38, 2  ;;  %v845_v53 = vadd.f32 %v803_v20, %v2689_v37 }
  0x8d   : > { %v846_v12 = vadd.f32 %v805_v46, %v2691_v59  ;;  %v847_v62 = vadd.f32 %v808_v56, %v2695_v43  ;;  %v848_v14 = vadd.f32 %v810_v7, %v2700_v54  ;;  %v849_v49 = vadd.f32 %v813_v2, %v2704_v58 }
  0x8e   : > { %v850_v17 = vadd.f32 %v815_v29, %v2706_v51  ;;  %v851_v23 = vadd.f32 %v818_v4, %v2710_v63  ;;  %v852_v31 = vadd.f32 %v820_v24, %v2712_v50  ;;  %v858_v1 = vrot.slane %v2671_v21, 2 }
  0x8f   : > { %v859_v38 = vrot.slane %v2673_v8, 2  ;;  %v861_v22 = vrot.slane %v2675_v41, 2  ;;  %v863_v48 = vrot.slane %v2677_v11, 2  ;;  %v855_v52 = vsel %vm390_vm1, %v853_v36, %v854_v26 }
  0x90   : > { %v857_v3 = vsel %vm390_vm1, %v854_v26, %v856_v34  ;;  %v864_v15 = vrot.slane %v2679_v45, 2  ;;  %v866_v27 = vrot.slane %v2681_v30, 2  ;;  %v868_v18 = vrot.slane %v2683_v47, 2 }
  0x91   : > { %v869_v44 = vrot.slane %v2685_v61, 2  ;;  %v871_v21 = vrot.slane %v2687_v57, 2  ;;  %v873_v8 = vrot.slane %v2689_v37, 2  ;;  %v874_v41 = vrot.slane %v2691_v59, 2 }
  0x92   : > { %v876_v11 = vrot.slane %v2693_v0, 2  ;;  %v878_v20 = vrot.slane %v2695_v43, 2  ;;  %v879_v46 = vrot.slane %v2700_v54, 2  ;;  %v881_v45 = vrot.slane %v2702_v28, 2 }
  0x93   : > { %v883_v30 = vrot.slane %v2704_v58, 2  ;;  %v884_v47 = vrot.slane %v2706_v51, 2  ;;  %v886_v61 = vrot.slane %v2708_v35, 2  ;;  %v860_v57 = vsel %vm390_vm1, %v858_v1, %v859_v38 }
  0x94   : > { %v888_v37 = vrot.slane %v2710_v63, 2  ;;  %v889_v59 = vrot.slane %v2712_v50, 2  ;;  %v891_v0 = vrot.slane %v2714_v16, 2  ;;  %v862_v43 = vsel %vm390_vm1, %v859_v38, %v861_v22 }
  0x95   : > { %v865_v54 = vsel %vm390_vm1, %v863_v48, %v864_v15  ;;  %v867_v28 = vsel %vm390_vm1, %v864_v15, %v866_v27  ;;  %v870_v58 = vsel %vm390_vm1, %v868_v18, %v869_v44  ;;  %v872_v51 = vsel %vm390_vm1, %v869_v44, %v871_v21  ;;  %v1762_v27 = vld [vmem:[%s1852_s16 + $0x58] sm:$0x3]  ;;  %v1763_v44 = vld [vmem:[%s1852_s16 + $0x60] sm:$0xff] }
  0x96   : > { %v875_v35 = vsel %vm390_vm1, %v873_v8, %v874_v41  ;;  %v877_v56 = vsel %vm390_vm1, %v874_v41, %v876_v11  ;;  %v880_v63 = vsel %vm390_vm1, %v878_v20, %v879_v46  ;;  %v882_v50 = vsel %vm390_vm1, %v879_v46, %v881_v45  ;;  %v1764_v8 = vld [vmem:[%s1852_s16 + $0x68] sm:$0xff]  ;;  %v1765_v11 = vld [vmem:[%s1852_s16 + $0x70] sm:$0x3]  ;;  %v1766_v46 = vld [vmem:[%s1852_s16 + $0x78] sm:$0xff] }
  0x97   : > { %v885_v16 = vsel %vm390_vm1, %v883_v30, %v884_v47  ;;  %v887_v7 = vsel %vm390_vm1, %v884_v47, %v886_v61  ;;  %v2807_v2 = vadd.f32 %v855_v52, %v837_v33  ;;  %v890_v29 = vsel %vm390_vm1, %v888_v37, %v889_v59  ;;  %v1759_v52 = vld [vmem:[%s1852_s16 + $0x40] sm:$0x3]  ;;  %v1768_v61 = vld [vmem:[%s1852_s16 + $0x88] sm:$0x3]  ;;  %v1769_v37 = vld [vmem:[%s1852_s16 + $0x90] sm:$0xff] }
  0x98   : > { %v892_v4 = vsel %vm390_vm1, %v889_v59, %v891_v0  ;;  %v2811_v24 = vadd.f32 %v857_v3, %v838_v25  ;;  %v2813_v36 = vadd.f32 %v860_v57, %v839_v39  ;;  %v2815_v26 = vadd.f32 %v862_v43, %v840_v5  ;;  %v1761_v3 = vld [vmem:[%s1852_s16 + $0x50] sm:$0xff]  ;;  %v1767_v30 = vld [vmem:[%s1852_s16 + $0x80] sm:$0xff]  ;;  %v1770_v0 = vld [vmem:[%s1852_s16 + $0x98] sm:$0xff] }
  0x99   : > { %3967 = vst [vmem:[#allocation2_spill] sm:$0xff] %v2807_v2  ;;  %v2817_v34 = vadd.f32 %v865_v54, %v841_v6  ;;  %v2819_v1 = vadd.f32 %v867_v28, %v842_v60  ;;  %v2821_v38 = vadd.f32 %v870_v58, %v843_v9  ;;  %v2823_v33 = vadd.f32 %v872_v51, %v844_v40  ;;  %v1771_v54 = vld [vmem:[%s1852_s16 + $0xa0] sm:$0x3]  ;;  %v1772_v58 = vld [vmem:[%s1852_s16 + $0xa8] sm:$0xff]  ;;  %v4008_v2 = vld [vmem:[#allocation17_spill] sm:$0xff] }
  0x9a   : > { %3968 = vst [vmem:[#allocation36_spill] sm:$0xff] %v2811_v24  ;;  %3969 = vst [vmem:[#allocation4_spill] sm:$0xff] %v2813_v36  ;;  %v2825_v22 = vadd.f32 %v875_v35, %v845_v53  ;;  %v2827_v25 = vadd.f32 %v877_v56, %v846_v12  ;;  %v2829_v39 = vadd.f32 %v880_v63, %v847_v62  ;;  %v1756_v53 = vld [vmem:[%s1852_s16 + $0x28] sm:$0x3]  ;;  %v1757_v12 = vld [vmem:[%s1852_s16 + $0x30] sm:$0xff] }
  0x9b   : > { %3970 = vst [vmem:[#allocation37_spill] sm:$0xff] %v2815_v26  ;;  %3971 = vst [vmem:[#allocation3_spill] sm:$0xff] %v2817_v34  ;;  %v2831_v5 = vadd.f32 %v882_v50, %v848_v14  ;;  %v2833_v6 = vadd.f32 %v885_v16, %v849_v49  ;;  %v2835_v60 = vadd.f32 %v887_v7, %v850_v17  ;;  %v1758_v14 = vld [vmem:[%s1852_s16 + $0x38] sm:$0xff]  ;;  %v1773_v35 = vld [vmem:[%s1852_s16 + $0xb0] sm:$0xff] }
  0x9c   : > { %3972 = vst [vmem:[#allocation5_spill] sm:$0xff] %v2819_v1  ;;  %3973 = vst [vmem:[#allocation6_spill] sm:$0xff] %v2821_v38  ;;  %v2837_v9 = vadd.f32 %v890_v29, %v851_v23  ;;  %v2839_v40 = vadd.f32 %v892_v4, %v852_v31  ;;  %v2842_v48 = vmul.f32 %v1756_v53, %v1756_v53  ;;  %v1760_v23 = vld [vmem:[%s1852_s16 + $0x48] sm:$0xff]  ;;  %v1774_v63 = vld [vmem:[%s1852_s16 + $0xb8] sm:$0x3] }
  0x9d   : > { %3974 = vst [vmem:[#allocation7_spill] sm:$0xff] %v2823_v33  ;;  %3975 = vst [vmem:[#allocation8_spill] sm:$0xff] %v2825_v22  ;;  %v2845_v62 = vmul.f32 %v1757_v12, %v1757_v12  ;;  %v2848_v49 = vmul.f32 %v1758_v14, %v1758_v14  ;;  %v2851_v17 = vmul.f32 %v1759_v52, %v1759_v52  ;;  %v1775_v16 = vld [vmem:[%s1852_s16 + $0xc0] sm:$0xff]  ;;  %v1776_v29 = vld [vmem:[%s1852_s16 + $0xc8] sm:$0xff] }
  0x9e   : > { %3976 = vst [vmem:[#allocation9_spill] sm:$0xff] %v2827_v25  ;;  %3977 = vst [vmem:[#allocation10_spill] sm:$0xff] %v2829_v39  ;;  %v2854_v31 = vmul.f32 %v1760_v23, %v1760_v23  ;;  %v2857_v15 = vmul.f32 %v1761_v3, %v1761_v3  ;;  %v2860_v18 = vmul.f32 %v1762_v27, %v1762_v27  ;;  %v1777_v53 = vld [vmem:[%s1852_s16 + $0xd0] sm:$0x3]  ;;  %v1778_v14 = vld [vmem:[%s1852_s16 + $0xd8] sm:$0xff] }
  0x9f   : > { %3978 = vst [vmem:[#allocation41_spill] sm:$0xff] %v2831_v5  ;;  %3979 = vst [vmem:[#allocation11_spill] sm:$0xff] %v2833_v6  ;;  %v2863_v21 = vmul.f32 %v1763_v44, %v1763_v44  ;;  %v2866_v41 = vmul.f32 %v1764_v8, %v1764_v8  ;;  %v2869_v20 = vmul.f32 %v1765_v11, %v1765_v11  ;;  %v1779_v23 = vld [vmem:[%s1852_s16 + $0xe0] sm:$0xff]  ;;  %v1780_v27 = vld [vmem:[%s1852_s16 + $0xe8] sm:$0x3] }
  0xa0   : > { %3980 = vst [vmem:[#allocation42_spill] sm:$0xff] %v2835_v60  ;;  %3981 = vst [vmem:[#allocation12_spill] sm:$0xff] %v2837_v9  ;;  %v2872_v45 = vmul.f32 %v1766_v46, %v1766_v46  ;;  %v2875_v47 = vmul.f32 %v1767_v30, %v1767_v30  ;;  %v2878_v57 = vmul.f32 %v1768_v61, %v1768_v61  ;;  %v1781_v8 = vld [vmem:[%s2014_s19] sm:$0xff]  ;;  %v1782_v46 = vld [vmem:[%s2014_s19 + $0x8] sm:$0xff] }
  0xa1   : > { %3982 = vst [vmem:[#allocation43_spill] sm:$0xff] %v2839_v40  ;;  %v2881_v59 = vmul.f32 %v1769_v37, %v1769_v37  ;;  %v2884_v43 = vmul.f32 %v1770_v0, %v1770_v0  ;;  %v2887_v28 = vmul.f32 %v1771_v54, %v1771_v54  ;;  %v2890_v51 = vmul.f32 %v1772_v58, %v1772_v58  ;;  %v1783_v61 = vld [vmem:[%s2014_s19 + $0x10] sm:$0x3]  ;;  %v1784_v0 = vld [vmem:[%s2014_s19 + $0x18] sm:$0xff]  ;;  %v1785_v58 = vld [vmem:[%s2014_s19 + $0x20] sm:$0xff] }
  0xa2   : > { %v2893_v56 = vmul.f32 %v1773_v35, %v1773_v35  ;;  %v2896_v50 = vmul.f32 %v1774_v63, %v1774_v63  ;;  %v2899_v7 = vmul.f32 %v1775_v16, %v1775_v16  ;;  %v2902_v4 = vmul.f32 %v1776_v29, %v1776_v29  ;;  %v1786_v63 = vld [vmem:[%s2014_s19 + $0x28] sm:$0x3]  ;;  %v3994_v9 = vld [vmem:[#allocation56_spill] sm:$0xff]  ;;  %v3995_v60 = vld [vmem:[#allocation61_spill] sm:$0xff] }
  0xa3   : > { %v2905_v12 = vmul.f32 %v1777_v53, %v1777_v53  ;;  %v2908_v52 = vmul.f32 %v1778_v14, %v1778_v14  ;;  %v2911_v3 = vmul.f32 %v1779_v23, %v1779_v23  ;;  %v2914_v44 = vmul.f32 %v1780_v27, %v1780_v27  ;;  %v3993_v40 = vld [vmem:[#allocation55_spill] sm:$0xff]  ;;  %v3996_v6 = vld [vmem:[#allocation62_spill] sm:$0xff]  ;;  %v4000_v22 = vld [vmem:[#allocation68_spill] sm:$0xff] }
  0xa4   : > { %3983 = vst [vmem:[#allocation14_spill] sm:$0xff] %v2899_v7  ;;  %3984 = vst [vmem:[#allocation15_spill] sm:$0xff] %v2902_v4  ;;  %v955_v11 = vmul.f32 %v1781_v8, %v1781_v8  ;;  %v956_v30 = vmul.f32 %v1782_v46, %v1782_v46  ;;  %v957_v37 = vmul.f32 %v1783_v61, %v1783_v61  ;;  %v3989_v46 = vld [vmem:[#allocation47_spill] sm:$0xff]  ;;  %v3998_v39 = vld [vmem:[#allocation66_spill] sm:$0xff] }
  0xa5   : > { %3985 = vst [vmem:[#allocation16_spill] sm:$0xff] %v2905_v12  ;;  %3986 = vst [vmem:[#allocation19_spill] sm:$0xff] %v2908_v52  ;;  %v958_v54 = vmul.f32 %v1784_v0, %v1784_v0  ;;  %v959_v35 = vmul.f32 %v1785_v58, %v1785_v58  ;;  %v960_v16 = vmul.f32 %v1786_v63, %v1786_v63  ;;  %v3990_v0 = vld [vmem:[#allocation48_spill] sm:$0xff]  ;;  %v3991_v58 = vld [vmem:[#allocation49_spill] sm:$0xff] }
  0xa6   : > { %3987 = vst [vmem:[#allocation20_spill] sm:$0xff] %v2911_v3  ;;  %3988 = vst [vmem:[#allocation21_spill] sm:$0xff] %v2914_v44  ;;  %v961_v29 = vmul.f32 %v2242_v42, %v2242_v42  ;;  %v962_v53 = vmul.f32 %v2245_v32, %v2245_v32  ;;  %v963_v14 = vmul.f32 %v2248_v10, %v2248_v10  ;;  %v3992_v63 = vld [vmem:[#allocation54_spill] sm:$0xff]  ;;  %v3997_v5 = vld [vmem:[#allocation63_spill] sm:$0xff] }
  0xa7   : > { %v964_v23 = vmul.f32 %v3926_v55, %v3926_v55  ;;  %v965_v27 = vmul.f32 %v3928_v19, %v3928_v19  ;;  %v966_v8 = vmul.f32 %v3930_v13, %v3930_v13  ;;  %v967_v61 = vmul.f32 %v3989_v46, %v3989_v46  ;;  %v3999_v25 = vld [vmem:[#allocation67_spill] sm:$0xff]  ;;  %v4001_v33 = vld [vmem:[#allocation69_spill] sm:$0xff]  ;;  %v4002_v38 = vld [vmem:[#allocation70_spill] sm:$0xff] }
  0xa8   : > { %v968_v42 = vmul.f32 %v3990_v0, %v3990_v0  ;;  %v969_v32 = vmul.f32 %v3991_v58, %v3991_v58  ;;  %v970_v10 = vmul.f32 %v3992_v63, %v3992_v63  ;;  %v971_v55 = vmul.f32 %v3993_v40, %v3993_v40  ;;  %v4003_v1 = vld [vmem:[#allocation71_spill] sm:$0xff]  ;;  %v4004_v34 = vld [vmem:[#allocation72_spill] sm:$0xff]  ;;  %v4005_v26 = vld [vmem:[#allocation73_spill] sm:$0xff] }
  0xa9   : > { %v972_v19 = vmul.f32 %v3994_v9, %v3994_v9  ;;  %v973_v13 = vmul.f32 %v3995_v60, %v3995_v60  ;;  %v974_v46 = vmul.f32 %v3996_v6, %v3996_v6  ;;  %v975_v0 = vmul.f32 %v3997_v5, %v3997_v5  ;;  %v4006_v36 = vld [vmem:[#allocation74_spill] sm:$0xff]  ;;  %v4007_v24 = vld [vmem:[#allocation13_spill] sm:$0xff] }
  0xaa   : > { %v976_v58 = vmul.f32 %v3998_v39, %v3998_v39  ;;  %v977_v63 = vmul.f32 %v3999_v25, %v3999_v25  ;;  %v978_v40 = vmul.f32 %v4000_v22, %v4000_v22  ;;  %v979_v9 = vmul.f32 %v4001_v33, %v4001_v33  ;;  %v4009_v33 = vld [vmem:[#allocation18_spill] sm:$0xff] }
  0xab   : > { %v980_v60 = vmul.f32 %v4002_v38, %v4002_v38  ;;  %v981_v6 = vmul.f32 %v4003_v1, %v4003_v1  ;;  %v982_v5 = vmul.f32 %v4004_v34, %v4004_v34  ;;  %v983_v39 = vmul.f32 %v4005_v26, %v4005_v26  ;;  %v4010_v52 = vld [vmem:[#allocation22_spill] sm:$0xff] }
  0xac   : > { %v984_v25 = vmul.f32 %v4006_v36, %v4006_v36  ;;  %v985_v22 = vadd.f32 %v955_v11, %v4007_v24  ;;  %v986_v44 = vadd.f32 %v956_v30, %v4008_v2  ;;  %v987_v3 = vadd.f32 %v957_v37, %v4009_v33  ;;  %v4011_v12 = vld [vmem:[#allocation26_spill] sm:$0xff]  ;;  %v4013_v37 = vld [vmem:[#allocation15_spill] sm:$0xff] }
  0xad   : > { %v988_v38 = vadd.f32 %v958_v54, %v4010_v52  ;;  %v989_v4 = vadd.f32 %v959_v35, %v4011_v12  ;;  %v990_v1 = vadd.f32 %v960_v16, %v2842_v48  ;;  %v991_v34 = vadd.f32 %v961_v29, %v2845_v62  ;;  %v4012_v30 = vld [vmem:[#allocation14_spill] sm:$0xff]  ;;  %v4014_v54 = vld [vmem:[#allocation16_spill] sm:$0xff]  ;;  %v4015_v35 = vld [vmem:[#allocation19_spill] sm:$0xff] }
  0xae   : > { %v992_v7 = vadd.f32 %v962_v53, %v2848_v49  ;;  %v993_v26 = vadd.f32 %v963_v14, %v2851_v17  ;;  %v994_v36 = vadd.f32 %v964_v23, %v2854_v31  ;;  %v995_v24 = vadd.f32 %v965_v27, %v2857_v15  ;;  %v4016_v16 = vld [vmem:[#allocation20_spill] sm:$0xff]  ;;  %v4017_v29 = vld [vmem:[#allocation21_spill] sm:$0xff] }
  0xaf   : > { %v996_v2 = vadd.f32 %v966_v8, %v2860_v18  ;;  %v997_v11 = vadd.f32 %v967_v61, %v2863_v21  ;;  %v998_v52 = vadd.f32 %v968_v42, %v2866_v41  ;;  %v999_v12 = vadd.f32 %v969_v32, %v2869_v20 }
  0xb0   : > { %v1000_v48 = vadd.f32 %v970_v10, %v2872_v45  ;;  %v1001_v62 = vadd.f32 %v971_v55, %v2875_v47  ;;  %v1002_v49 = vadd.f32 %v972_v19, %v2878_v57  ;;  %v1003_v17 = vadd.f32 %v973_v13, %v2881_v59 }
  0xb1   : > { %v1004_v31 = vadd.f32 %v974_v46, %v2884_v43  ;;  %v1005_v15 = vadd.f32 %v975_v0, %v2887_v28  ;;  %v1006_v18 = vadd.f32 %v976_v58, %v2890_v51  ;;  %v1007_v21 = vadd.f32 %v977_v63, %v2893_v56 }
  0xb2   : > { %v1008_v41 = vadd.f32 %v978_v40, %v2896_v50  ;;  %v1009_v20 = vadd.f32 %v979_v9, %v4012_v30  ;;  %v1010_v45 = vadd.f32 %v980_v60, %v4013_v37  ;;  %v1011_v47 = vadd.f32 %v981_v6, %v4014_v54 }
  0xb3   : > { %v1012_v57 = vadd.f32 %v982_v5, %v4015_v35  ;;  %v1013_v59 = vadd.f32 %v983_v39, %v4016_v16  ;;  %v1014_v43 = vadd.f32 %v984_v25, %v4017_v29  ;;  %v1015_v53 = vadd.f32 %v988_v38, %v985_v22 }
  0xb4   : > { %v1016_v28 = vadd.f32 %v989_v4, %v986_v44  ;;  %v1017_v14 = vadd.f32 %v990_v1, %v987_v3  ;;  %v1018_v51 = vadd.f32 %v991_v34, %v988_v38  ;;  %v1019_v23 = vadd.f32 %v992_v7, %v989_v4 }
  0xb5   : > { %v1020_v56 = vadd.f32 %v993_v26, %v990_v1  ;;  %v1021_v27 = vadd.f32 %v994_v36, %v991_v34  ;;  %v1022_v50 = vadd.f32 %v995_v24, %v992_v7  ;;  %v1023_v8 = vadd.f32 %v996_v2, %v993_v26 }
  0xb6   : > { %v1024_v61 = vadd.f32 %v997_v11, %v994_v36  ;;  %v1025_v42 = vadd.f32 %v998_v52, %v995_v24  ;;  %v1026_v32 = vadd.f32 %v999_v12, %v996_v2  ;;  %v1027_v10 = vadd.f32 %v1000_v48, %v997_v11 }
  0xb7   : > { %v1028_v55 = vadd.f32 %v1001_v62, %v998_v52  ;;  %v1029_v19 = vadd.f32 %v1002_v49, %v999_v12  ;;  %v1030_v13 = vadd.f32 %v1003_v17, %v1000_v48  ;;  %v1031_v46 = vadd.f32 %v1004_v31, %v1001_v62 }
  0xb8   : > { %v1032_v0 = vadd.f32 %v1005_v15, %v1002_v49  ;;  %v1033_v58 = vadd.f32 %v1006_v18, %v1003_v17  ;;  %v1034_v63 = vadd.f32 %v1007_v21, %v1004_v31  ;;  %v1035_v40 = vadd.f32 %v1008_v41, %v1005_v15 }
  0xb9   : > { %v1036_v44 = vadd.f32 %v1009_v20, %v1006_v18  ;;  %v1037_v3 = vadd.f32 %v1010_v45, %v1007_v21  ;;  %v1038_v9 = vadd.f32 %v1011_v47, %v1008_v41  ;;  %v3000_v4 = vadd.f32 %v1015_v53, %v991_v34 }
  0xba   : > { %v3002_v60 = vadd.f32 %v1016_v28, %v992_v7  ;;  %v3004_v6 = vadd.f32 %v1017_v14, %v993_v26  ;;  %v3006_v5 = vadd.f32 %v1018_v51, %v994_v36  ;;  %v3008_v39 = vadd.f32 %v1019_v23, %v995_v24 }
  0xbb   : > { %v3010_v25 = vadd.f32 %v1020_v56, %v996_v2  ;;  %v3012_v22 = vadd.f32 %v1021_v27, %v997_v11  ;;  %v3014_v33 = vadd.f32 %v1022_v50, %v998_v52  ;;  %v3016_v38 = vadd.f32 %v1023_v8, %v999_v12 }
  0xbc   : > { %v3018_v1 = vadd.f32 %v1024_v61, %v1000_v48  ;;  %v3020_v34 = vadd.f32 %v1025_v42, %v1001_v62  ;;  %v3022_v7 = vadd.f32 %v1026_v32, %v1002_v49  ;;  %v3024_v26 = vadd.f32 %v1027_v10, %v1003_v17 }
  0xbd   : > { %v3026_v36 = vadd.f32 %v1028_v55, %v1004_v31  ;;  %v3028_v24 = vadd.f32 %v1029_v19, %v1005_v15  ;;  %v3030_v2 = vadd.f32 %v1030_v13, %v1006_v18  ;;  %v1087_v11 = vrot.slane %v3000_v4, 1 }
  0xbe   : > { %v1088_v52 = vrot.slane %v3002_v60, 1  ;;  %v3034_v12 = vadd.f32 %v1031_v46, %v1007_v21  ;;  %v3036_v48 = vadd.f32 %v1032_v0, %v1008_v41  ;;  %v3038_v62 = vadd.f32 %v1033_v58, %v1009_v20 }
  0xbf   : > { %v3040_v49 = vadd.f32 %v1034_v63, %v1010_v45  ;;  %v3042_v17 = vadd.f32 %v1035_v40, %v1011_v47  ;;  %v3044_v31 = vadd.f32 %v1036_v44, %v1012_v57  ;;  %v3046_v15 = vadd.f32 %v1037_v3, %v1013_v59 }
  0xc0   : > { %v3048_v18 = vadd.f32 %v1038_v9, %v1014_v43  ;;  %v1090_v30 = vrot.slane %v3004_v6, 1  ;;  %v1092_v37 = vrot.slane %v3006_v5, 1  ;;  %v1093_v21 = vrot.slane %v3008_v39, 1 }
  0xc1   : > { %v1095_v41 = vrot.slane %v3010_v25, 1  ;;  %v1089_v20 = vsel %vm317_vm0, %v1087_v11, %v1088_v52  ;;  %v1097_v45 = vrot.slane %v3012_v22, 1  ;;  %v1098_v54 = vrot.slane %v3014_v33, 1 }
  0xc2   : > { %v1100_v47 = vrot.slane %v3016_v38, 1  ;;  %v1102_v35 = vrot.slane %v3018_v1, 1  ;;  %v1103_v57 = vrot.slane %v3020_v34, 1  ;;  %v1105_v16 = vrot.slane %v3022_v7, 1 }
  0xc3   : > { %v1107_v59 = vrot.slane %v3024_v26, 1  ;;  %v1108_v29 = vrot.slane %v3026_v36, 1  ;;  %v1110_v43 = vrot.slane %v3028_v24, 1  ;;  %v1112_v53 = vrot.slane %v3030_v2, 1 }
  0xc4   : > { %v1113_v28 = vrot.slane %v3034_v12, 1  ;;  %v1115_v14 = vrot.slane %v3036_v48, 1  ;;  %v1117_v51 = vrot.slane %v3038_v62, 1  ;;  %v1118_v23 = vrot.slane %v3040_v49, 1 }
  0xc5   : > { %v1120_v56 = vrot.slane %v3042_v17, 1  ;;  %v1091_v27 = vsel %vm317_vm0, %v1088_v52, %v1090_v30  ;;  %v1094_v50 = vsel %vm317_vm0, %v1092_v37, %v1093_v21  ;;  %v1122_v8 = vrot.slane %v3044_v31, 1 }
  0xc6   : > { %v1123_v61 = vrot.slane %v3046_v15, 1  ;;  %v1096_v42 = vsel %vm317_vm0, %v1093_v21, %v1095_v41  ;;  %v1099_v32 = vsel %vm317_vm0, %v1097_v45, %v1098_v54  ;;  %v1101_v10 = vsel %vm317_vm0, %v1098_v54, %v1100_v47 }
  0xc7   : > { %v1125_v55 = vrot.slane %v3048_v18, 1  ;;  %v1104_v19 = vsel %vm317_vm0, %v1102_v35, %v1103_v57  ;;  %v1106_v13 = vsel %vm317_vm0, %v1103_v57, %v1105_v16  ;;  %v1109_v46 = vsel %vm317_vm0, %v1107_v59, %v1108_v29 }
  0xc8   : > { %v1111_v0 = vsel %vm317_vm0, %v1108_v29, %v1110_v43  ;;  %v1114_v58 = vsel %vm317_vm0, %v1112_v53, %v1113_v28  ;;  %v1116_v63 = vsel %vm317_vm0, %v1113_v28, %v1115_v14  ;;  %v1119_v40 = vsel %vm317_vm0, %v1117_v51, %v1118_v23 }
  0xc9   : > { %v1121_v44 = vsel %vm317_vm0, %v1118_v23, %v1120_v56  ;;  %v1124_v3 = vsel %vm317_vm0, %v1122_v8, %v1123_v61  ;;  %v1143_v9 = vadd.f32 %v1089_v20, %v3000_v4  ;;  %v1144_v11 = vadd.f32 %v1091_v27, %v3002_v60 }
  0xca   : > { %v1145_v52 = vadd.f32 %v1094_v50, %v3006_v5  ;;  %v1126_v30 = vsel %vm317_vm0, %v1123_v61, %v1125_v55  ;;  %v1146_v37 = vadd.f32 %v1096_v42, %v3008_v39  ;;  %v1147_v21 = vadd.f32 %v1099_v32, %v3012_v22 }
  0xcb   : > { %v1148_v41 = vadd.f32 %v1101_v10, %v3014_v33  ;;  %v1149_v45 = vadd.f32 %v1104_v19, %v3018_v1  ;;  %v1150_v54 = vadd.f32 %v1106_v13, %v3020_v34  ;;  %v1159_v47 = vrot.slane %v3000_v4, 2 }
  0xcc   : > { %v1160_v20 = vrot.slane %v3002_v60, 2  ;;  %v1151_v35 = vadd.f32 %v1109_v46, %v3024_v26  ;;  %v1152_v57 = vadd.f32 %v1111_v0, %v3026_v36  ;;  %v1153_v16 = vadd.f32 %v1114_v58, %v3030_v2 }
  0xcd   : > { %v1154_v59 = vadd.f32 %v1116_v63, %v3034_v12  ;;  %v1155_v29 = vadd.f32 %v1119_v40, %v3038_v62  ;;  %v1156_v43 = vadd.f32 %v1121_v44, %v3040_v49  ;;  %v1157_v53 = vadd.f32 %v1124_v3, %v3044_v31 }
  0xce   : > { %v1158_v28 = vadd.f32 %v1126_v30, %v3046_v15  ;;  %v1162_v4 = vrot.slane %v3004_v6, 2  ;;  %v1164_v60 = vrot.slane %v3006_v5, 2  ;;  %v1165_v14 = vrot.slane %v3008_v39, 2 }
  0xcf   : > { %v1167_v51 = vrot.slane %v3010_v25, 2  ;;  %v1161_v23 = vsel %vm390_vm1, %v1159_v47, %v1160_v20  ;;  %v1169_v56 = vrot.slane %v3012_v22, 2  ;;  %v1170_v27 = vrot.slane %v3014_v33, 2 }
  0xd0   : > { %v1172_v50 = vrot.slane %v3016_v38, 2  ;;  %v1174_v8 = vrot.slane %v3018_v1, 2  ;;  %v1175_v61 = vrot.slane %v3020_v34, 2  ;;  %v1177_v6 = vrot.slane %v3022_v7, 2 }
  0xd1   : > { %v1179_v5 = vrot.slane %v3024_v26, 2  ;;  %v1180_v39 = vrot.slane %v3026_v36, 2  ;;  %v1182_v25 = vrot.slane %v3028_v24, 2  ;;  %v1184_v42 = vrot.slane %v3030_v2, 2 }
  0xd2   : > { %v1185_v22 = vrot.slane %v3034_v12, 2  ;;  %v1187_v33 = vrot.slane %v3036_v48, 2  ;;  %v1189_v38 = vrot.slane %v3038_v62, 2  ;;  %v1190_v1 = vrot.slane %v3040_v49, 2 }
  0xd3   : > { %v1192_v34 = vrot.slane %v3042_v17, 2  ;;  %v1163_v7 = vsel %vm390_vm1, %v1160_v20, %v1162_v4  ;;  %v1166_v26 = vsel %vm390_vm1, %v1164_v60, %v1165_v14  ;;  %v1194_v36 = vrot.slane %v3044_v31, 2  ;;  %v4034_v4 = vld [vmem:[#allocation75_spill] sm:$0xff] }
  0xd4   : > { %v1195_v24 = vrot.slane %v3046_v15, 2  ;;  %v1168_v2 = vsel %vm390_vm1, %v1165_v14, %v1167_v51  ;;  %v1171_v12 = vsel %vm390_vm1, %v1169_v56, %v1170_v27  ;;  %v1173_v48 = vsel %vm390_vm1, %v1170_v27, %v1172_v50  ;;  %v4035_v60 = vld [vmem:[#allocation39_spill] sm:$0xff]  ;;  %v4038_v51 = vld [vmem:[#allocation77_spill] sm:$0xff]  ;;  %v4043_v50 = vld [vmem:[#allocation46_spill] sm:$0xff] }
  0xd5   : > { %v1197_v62 = vrot.slane %v3048_v18, 2  ;;  %v1176_v49 = vsel %vm390_vm1, %v1174_v8, %v1175_v61  ;;  %v1178_v17 = vsel %vm390_vm1, %v1175_v61, %v1177_v6  ;;  %v1181_v32 = vsel %vm390_vm1, %v1179_v5, %v1180_v39  ;;  %v4042_v27 = vld [vmem:[#allocation79_spill] sm:$0xff]  ;;  %v4046_v61 = vld [vmem:[#allocation81_spill] sm:$0xff] }
  0xd6   : > { %v1183_v10 = vsel %vm390_vm1, %v1180_v39, %v1182_v25  ;;  %v1186_v31 = vsel %vm390_vm1, %v1184_v42, %v1185_v22  ;;  %v1188_v15 = vsel %vm390_vm1, %v1185_v22, %v1187_v33  ;;  %v1191_v55 = vsel %vm390_vm1, %v1189_v38, %v1190_v1  ;;  %v4047_v5 = vld [vmem:[#allocation51_spill] sm:$0xff]  ;;  %v4048_v39 = vld [vmem:[#allocation82_spill] sm:$0xff]  ;;  %v4049_v42 = vld [vmem:[#allocation52_spill] sm:$0xff] }
  0xd7   : > { %v1193_v19 = vsel %vm390_vm1, %v1190_v1, %v1192_v34  ;;  %v1196_v13 = vsel %vm390_vm1, %v1194_v36, %v1195_v24  ;;  %v3143_v46 = vadd.f32 %v1161_v23, %v1143_v9  ;;  %v3145_v18 = vadd.f32 %v1163_v7, %v1144_v11  ;;  %v4039_v23 = vld [vmem:[#allocation44_spill] sm:$0xff]  ;;  %v4050_v22 = vld [vmem:[#allocation83_spill] sm:$0xff]  ;;  %v4051_v38 = vld [vmem:[#allocation53_spill] sm:$0xff] }
  0xd8   : > { %v3147_v0 = vadd.f32 %v1166_v26, %v1145_v52  ;;  %v1198_v58 = vsel %vm390_vm1, %v1195_v24, %v1197_v62  ;;  %v3150_v63 = vadd.f32 %v1168_v2, %v1146_v37  ;;  %v3152_v40 = vadd.f32 %v1171_v12, %v1147_v21  ;;  %v4052_v1 = vld [vmem:[#allocation84_spill] sm:$0xff]  ;;  %v4053_v7 = vld [vmem:[#allocation57_spill] sm:$0xff]  ;;  %v4055_v24 = vld [vmem:[#allocation58_spill] sm:$0xff] }
  0xd9   : > { %4018 = vst [vmem:[#allocation23_spill] sm:$0xff] %v3145_v18  ;;  %v3154_v44 = vadd.f32 %v1173_v48, %v1148_v41  ;;  %v3156_v3 = vadd.f32 %v1176_v49, %v1149_v45  ;;  %v3158_v30 = vadd.f32 %v1178_v17, %v1150_v54  ;;  %v3160_v47 = vadd.f32 %v1181_v32, %v1151_v35  ;;  %v4033_v45 = vld [vmem:[#allocation38_spill] sm:$0xff]  ;;  %v4036_v35 = vld [vmem:[#allocation76_spill] sm:$0xff]  ;;  %v4054_v26 = vld [vmem:[#allocation85_spill] sm:$0xff] }
  0xda   : > { %4019 = vst [vmem:[#allocation24_spill] sm:$0xff] %v3147_v0  ;;  %4020 = vst [vmem:[#allocation25_spill] sm:$0xff] %v3150_v63  ;;  %v3162_v9 = vadd.f32 %v1183_v10, %v1152_v57  ;;  %v3164_v11 = vadd.f32 %v1186_v31, %v1153_v16  ;;  %v3166_v52 = vadd.f32 %v1188_v15, %v1154_v59  ;;  %v4037_v57 = vld [vmem:[#allocation40_spill] sm:$0xff]  ;;  %v4040_v59 = vld [vmem:[#allocation78_spill] sm:$0xff] }
  0xdb   : > { %4021 = vst [vmem:[#allocation27_spill] sm:$0xff] %v3152_v40  ;;  %4022 = vst [vmem:[#allocation28_spill] sm:$0xff] %v3154_v44  ;;  %v3168_v20 = vadd.f32 %v1191_v55, %v1155_v29  ;;  %v3170_v37 = vadd.f32 %v1193_v19, %v1156_v43  ;;  %v3172_v21 = vadd.f32 %v1196_v13, %v1157_v53  ;;  %v4041_v29 = vld [vmem:[#allocation45_spill] sm:$0xff]  ;;  %v4044_v53 = vld [vmem:[#allocation80_spill] sm:$0xff] }
  0xdc   : > { %4023 = vst [vmem:[#allocation29_spill] sm:$0xff] %v3156_v3  ;;  %4024 = vst [vmem:[#allocation30_spill] sm:$0xff] %v3158_v30  ;;  %v3174_v41 = vadd.f32 %v1198_v58, %v1158_v28  ;;  %v1231_v54 = vmul.f32 %v4034_v4, %v4033_v45  ;;  %v1232_v14 = vmul.f32 %v4036_v35, %v4035_v60  ;;  %v4045_v28 = vld [vmem:[#allocation50_spill] sm:$0xff]  ;;  %v4057_v48 = vld [vmem:[#allocation59_spill] sm:$0xff] }
  0xdd   : > { %4025 = vst [vmem:[#allocation31_spill] sm:$0xff] %v3160_v47  ;;  %4026 = vst [vmem:[#allocation32_spill] sm:$0xff] %v3162_v9  ;;  %v1233_v16 = vmul.f32 %v4038_v51, %v4037_v57  ;;  %v1234_v56 = vmul.f32 %v4040_v59, %v4039_v23  ;;  %v1235_v43 = vmul.f32 %v4042_v27, %v4041_v29  ;;  %v4056_v2 = vld [vmem:[#allocation86_spill] sm:$0xff]  ;;  %v4058_v62 = vld [vmem:[#allocation87_spill] sm:$0xff] }
  0xde   : > { %4027 = vst [vmem:[#allocation33_spill] sm:$0xff] %v3164_v11  ;;  %4028 = vst [vmem:[#allocation34_spill] sm:$0xff] %v3166_v52  ;;  %v1236_v8 = vmul.f32 %v4044_v53, %v4043_v50  ;;  %v1237_v6 = vmul.f32 %v4046_v61, %v4045_v28  ;;  %v1238_v25 = vmul.f32 %v4048_v39, %v4047_v5  ;;  %v4059_v17 = vld [vmem:[#allocation60_spill] sm:$0xff]  ;;  %v4062_v15 = vld [vmem:[#allocation89_spill] sm:$0xff] }
  0xdf   : > { %4029 = vst [vmem:[#allocation35_spill] sm:$0xff] %v3168_v20  ;;  %4030 = vst [vmem:[#allocation47_spill] sm:$0xff] %v3170_v37  ;;  %v1239_v33 = vmul.f32 %v4050_v22, %v4049_v42  ;;  %v1240_v34 = vmul.f32 %v4052_v1, %v4051_v38  ;;  %v1241_v36 = vmul.f32 %v4054_v26, %v4053_v7  ;;  %v4060_v32 = vld [vmem:[#allocation88_spill] sm:$0xff]  ;;  %v4063_v19 = vld [vmem:[#allocation65_spill] sm:$0xff] }
  0xe0   : > { %4031 = vst [vmem:[#allocation48_spill] sm:$0xff] %v3172_v21  ;;  %4032 = vst [vmem:[#allocation49_spill] sm:$0xff] %v3174_v41  ;;  %v1242_v12 = vmul.f32 %v4056_v2, %v4055_v24  ;;  %v1243_v49 = vmul.f32 %v4058_v62, %v4057_v48  ;;  %v1244_v10 = vmul.f32 %v4060_v32, %v4059_v17  ;;  %v4061_v31 = vld [vmem:[#allocation64_spill] sm:$0xff]  ;;  %v4064_v13 = vld [vmem:[#allocation90_spill] sm:$0xff] }
  0xe1   : > { %v1245_v55 = vmul.f32 %v4062_v15, %v4061_v31  ;;  %v1246_v58 = vmul.f32 %v4064_v13, %v4063_v19  ;;  %v3208_v41 = vadd.f32 %v1231_v54, %v1231_v54  ;;  %v3210_v21 = vadd.f32 %v1232_v14, %v1232_v14  ;;  %v4084_v63 = vld [vmem:[#allocation5_spill] sm:$0xff] }
  0xe2   : > { %v3212_v37 = vadd.f32 %v1233_v16, %v1233_v16  ;;  %v3214_v20 = vadd.f32 %v1234_v56, %v1234_v56  ;;  %v3216_v52 = vadd.f32 %v1235_v43, %v1235_v43  ;;  %v3218_v11 = vadd.f32 %v1236_v8, %v1236_v8  ;;  %v4088_v18 = vld [vmem:[#allocation9_spill] sm:$0xff] }
  0xe3   : > { %v3220_v9 = vadd.f32 %v1237_v6, %v1237_v6  ;;  %v3222_v47 = vadd.f32 %v1238_v25, %v1238_v25  ;;  %v3224_v30 = vadd.f32 %v1239_v33, %v1239_v33  ;;  %v3226_v3 = vadd.f32 %v1240_v34, %v1240_v34 }
  0xe4   : > { %v3228_v54 = vadd.f32 %v1241_v36, %v1241_v36  ;;  %v3230_v14 = vadd.f32 %v1242_v12, %v1242_v12  ;;  %v3232_v16 = vadd.f32 %v1243_v49, %v1243_v49  ;;  %v3234_v56 = vadd.f32 %v1244_v10, %v1244_v10 }
  0xe5   : > { %v3236_v43 = vadd.f32 %v1245_v55, %v1245_v55  ;;  %v3238_v8 = vadd.f32 %v1246_v58, %v1246_v58  ;;  %v1263_v6 = vmul.f32 %v4033_v45, %v4033_v45  ;;  %v1264_v25 = vmul.f32 %v4035_v60, %v4035_v60 }
  0xe6   : > { %v1265_v33 = vmul.f32 %v4037_v57, %v4037_v57  ;;  %v1266_v34 = vmul.f32 %v4039_v23, %v4039_v23  ;;  %v1267_v36 = vmul.f32 %v4041_v29, %v4041_v29  ;;  %v1268_v12 = vmul.f32 %v4043_v50, %v4043_v50 }
  0xe7   : > { %v1269_v49 = vmul.f32 %v4045_v28, %v4045_v28  ;;  %v1270_v45 = vmul.f32 %v4047_v5, %v4047_v5  ;;  %v1271_v60 = vmul.f32 %v4049_v42, %v4049_v42  ;;  %v1272_v57 = vmul.f32 %v4051_v38, %v4051_v38 }
  0xe8   : > { %v1273_v23 = vmul.f32 %v4053_v7, %v4053_v7  ;;  %v1274_v29 = vmul.f32 %v4055_v24, %v4055_v24  ;;  %v1275_v50 = vmul.f32 %v4057_v48, %v4057_v48  ;;  %v3268_v28 = vmul.f32 %v4059_v17, %v4059_v17 }
  0xe9   : > { %v3272_v5 = vmul.f32 %v4061_v31, %v4061_v31  ;;  %v3276_v42 = vmul.f32 %v4063_v19, %v4063_v19  ;;  %v1279_v38 = vmul.f32 %v4034_v4, %v4034_v4  ;;  %v1280_v7 = vmul.f32 %v4036_v35, %v4036_v35 }
  0xea   : > { %v1281_v24 = vmul.f32 %v4038_v51, %v4038_v51  ;;  %v1282_v48 = vmul.f32 %v4040_v59, %v4040_v59  ;;  %v1283_v17 = vmul.f32 %v4042_v27, %v4042_v27  ;;  %v1284_v10 = vmul.f32 %v4044_v53, %v4044_v53 }
  0xeb   : > { %v1285_v31 = vmul.f32 %v4046_v61, %v4046_v61  ;;  %v1286_v4 = vmul.f32 %v4048_v39, %v4048_v39  ;;  %v1287_v35 = vmul.f32 %v4050_v22, %v4050_v22  ;;  %v1288_v51 = vmul.f32 %v4052_v1, %v4052_v1 }
  0xec   : > { %v1289_v59 = vmul.f32 %v4054_v26, %v4054_v26  ;;  %v1290_v27 = vmul.f32 %v4056_v2, %v4056_v2  ;;  %v1291_v53 = vmul.f32 %v4058_v62, %v4058_v62  ;;  %v1292_v61 = vmul.f32 %v4060_v32, %v4060_v32 }
  0xed   : > { %v1293_v39 = vmul.f32 %v4062_v15, %v4062_v15  ;;  %v1294_v22 = vmul.f32 %v4064_v13, %v4064_v13  ;;  %v3310_v55 = vadd.f32 %v1279_v38, %v1263_v6  ;;  %v3312_v1 = vadd.f32 %v1280_v7, %v1264_v25 }
  0xee   : > { %v3314_v26 = vadd.f32 %v1281_v24, %v1265_v33  ;;  %v3316_v19 = vadd.f32 %v1282_v48, %v1266_v34  ;;  %v3318_v2 = vadd.f32 %v1283_v17, %v1267_v36  ;;  %v3320_v62 = vadd.f32 %v1284_v10, %v1268_v12 }
  0xef   : > { %v3322_v58 = vadd.f32 %v1285_v31, %v1269_v49  ;;  %v3324_v32 = vadd.f32 %v1286_v4, %v1270_v45  ;;  %v3327_v15 = vadd.f32 0.0081, %v3208_v41  ;;  %v3330_v13 = vadd.f32 0.0081, %v3210_v21 }
  0xf0   : > { %v3332_v6 = vadd.f32 %v1287_v35, %v1271_v60  ;;  %v3335_v25 = vadd.f32 0.0081, %v3212_v37  ;;  %v3338_v33 = vadd.f32 0.0081, %v3214_v20  ;;  %v3341_v34 = vadd.f32 0.0081, %v3216_v52 }
  0xf1   : > { %v3343_v36 = vadd.f32 %v1288_v51, %v1272_v57  ;;  %v3346_v12 = vadd.f32 0.0081, %v3218_v11  ;;  %v3349_v49 = vadd.f32 0.0081, %v3220_v9  ;;  %v3352_v45 = vadd.f32 0.0081, %v3222_v47 }
  0xf2   : > { %v3354_v60 = vadd.f32 %v1289_v59, %v1273_v23  ;;  %v3357_v38 = vadd.f32 0.0081, %v3224_v30  ;;  %v3360_v7 = vadd.f32 0.0081, %v3226_v3  ;;  %v3363_v57 = vadd.f32 0.0081, %v3228_v54 }
  0xf3   : > { %4065 = vst [vmem:[#allocation54_spill] sm:$0xff] %v3343_v36  ;;  %4066 = vst [vmem:[#allocation55_spill] sm:$0xff] %v3349_v49  ;;  %v3365_v24 = vadd.f32 %v1290_v27, %v1274_v29  ;;  %v3368_v48 = vadd.f32 0.0081, %v3230_v14  ;;  %v3371_v17 = vadd.f32 0.0081, %v3232_v16  ;;  %v3376_v10 = vadd.f32 %v1291_v53, %v1275_v50 }
  0xf4   : > { %4067 = vst [vmem:[#allocation56_spill] sm:$0xff] %v3352_v45  ;;  %4068 = vst [vmem:[#allocation61_spill] sm:$0xff] %v3354_v60  ;;  %v3374_v23 = vadd.f32 0.0081, %v3234_v56  ;;  %v3379_v31 = vadd.f32 0.0081, %v3236_v43 }
  0xf5   : > { %4069 = vst [vmem:[#allocation62_spill] sm:$0xff] %v3357_v38  ;;  %4070 = vst [vmem:[#allocation63_spill] sm:$0xff] %v3360_v7  ;;  %v3382_v4 = vadd.f32 0.0081, %v3238_v8  ;;  %v4079_v35 = vld [vmem:[#allocation2_spill] sm:$0xff]  ;;  %v4080_v51 = vld [vmem:[#allocation36_spill] sm:$0xff] }
  0xf6   : > { %4071 = vst [vmem:[#allocation66_spill] sm:$0xff] %v3363_v57  ;;  %4072 = vst [vmem:[#allocation67_spill] sm:$0xff] %v3365_v24  ;;  %v1327_v29 = vmul.f32 18.0, %v4079_v35  ;;  %v1328_v59 = vmul.f32 18.0, %v4080_v51  ;;  %v4081_v27 = vld [vmem:[#allocation4_spill] sm:$0xff]  ;;  %v4082_v57 = vld [vmem:[#allocation37_spill] sm:$0xff] }
  0xf7   : > { %4073 = vst [vmem:[#allocation68_spill] sm:$0xff] %v3368_v48  ;;  %4074 = vst [vmem:[#allocation69_spill] sm:$0xff] %v3371_v17  ;;  %v1329_v48 = vmul.f32 18.0, %v4081_v27  ;;  %v1330_v44 = vmul.f32 18.0, %v4082_v57  ;;  %v4083_v17 = vld [vmem:[#allocation3_spill] sm:$0xff]  ;;  %v4085_v50 = vld [vmem:[#allocation6_spill] sm:$0xff] }
  0xf8   : > { %4075 = vst [vmem:[#allocation70_spill] sm:$0xff] %v3374_v23  ;;  %4076 = vst [vmem:[#allocation71_spill] sm:$0xff] %v3376_v10  ;;  %v1331_v40 = vmul.f32 18.0, %v4083_v17  ;;  %v1332_v23 = vmul.f32 18.0, %v4084_v63  ;;  %v1333_v53 = vmul.f32 18.0, %v4085_v50  ;;  %v4086_v7 = vld [vmem:[#allocation7_spill] sm:$0xff] }
  0xf9   : > { %4077 = vst [vmem:[#allocation72_spill] sm:$0xff] %v3379_v31  ;;  %4078 = vst [vmem:[#allocation73_spill] sm:$0xff] %v3382_v4  ;;  %v1334_v0 = vmul.f32 18.0, %v4086_v7  ;;  %v4087_v31 = vld [vmem:[#allocation8_spill] sm:$0xff]  ;;  %v1336_v4 = vmul.f32 18.0, %v4088_v18  ;;  %v4089_v45 = vld [vmem:[#allocation10_spill] sm:$0xff] }
  0xfa   : > { %v1335_v38 = vmul.f32 18.0, %v4087_v31  ;;  %v1337_v35 = vmul.f32 18.0, %v4089_v45  ;;  %v4090_v10 = vld [vmem:[#allocation41_spill] sm:$0xff]  ;;  %v4091_v24 = vld [vmem:[#allocation11_spill] sm:$0xff]  ;;  %v4092_v49 = vld [vmem:[#allocation42_spill] sm:$0xff]  ;;  %v3405_v45 = vmul.f32 9.0, %v3143_v46  ;;  %v3420_v46 = vadd.f32 %v1294_v22, %v3276_v42 }
  0xfb   : > { %v1338_v51 = vmul.f32 18.0, %v4090_v10  ;;  %v1339_v27 = vmul.f32 18.0, %v4091_v24  ;;  %v1340_v57 = vmul.f32 18.0, %v4092_v49  ;;  %v4093_v60 = vld [vmem:[#allocation12_spill] sm:$0xff]  ;;  %v1343_v63 = vsub.f32 0.0729, %v3208_v41 }
  0xfc   : > { %v1341_v17 = vmul.f32 18.0, %v4093_v60  ;;  %v1344_v50 = vsub.f32 0.0729, %v3210_v21  ;;  %v4094_v36 = vld [vmem:[#allocation43_spill] sm:$0xff]  ;;  %v1345_v31 = vsub.f32 0.0729, %v3212_v37  ;;  %v3408_v10 = vadd.f32 %v1292_v61, %v3268_v28 }
  0xfd   : > { %v1342_v7 = vmul.f32 18.0, %v4094_v36  ;;  %v1346_v18 = vsub.f32 0.0729, %v3214_v20  ;;  %4095 = vst [vmem:[#allocation74_spill] sm:$0xff] %v3405_v45  ;;  %v1347_v49 = vsub.f32 0.0729, %v3216_v52  ;;  %v3414_v21 = vadd.f32 %v1293_v39, %v3272_v5 }
  0xfe   : > { %v1348_v60 = vsub.f32 0.0729, %v3218_v11  ;;  %v1349_v41 = vsub.f32 0.0729, %v3220_v9  ;;  %v1350_v36 = vsub.f32 0.0729, %v3222_v47  ;;  %v1359_v47 = vadd.f32 %v1343_v63, %v1327_v29 }
  0xff   : > { %4096 = vst [vmem:[#allocation13_spill] sm:$0xff] %v3414_v21  ;;  %v1351_v37 = vsub.f32 0.0729, %v3224_v30  ;;  %v1352_v20 = vsub.f32 0.0729, %v3226_v3  ;;  %4097 = vst [vmem:[#allocation17_spill] sm:$0xff] %v3420_v46  ;;  %v1360_v39 = vadd.f32 %v1344_v50, %v1328_v59  ;;  %v1361_v30 = vadd.f32 %v1345_v31, %v1329_v48 }
 0x100   : > { %v1353_v28 = vsub.f32 0.0729, %v3228_v54  ;;  %v1354_v52 = vsub.f32 0.0729, %v3230_v14  ;;  %v1355_v11 = vsub.f32 0.0729, %v3232_v16  ;;  %v1362_v24 = vadd.f32 %v1346_v18, %v1330_v44 }
 0x101   : > { %v1356_v9 = vsub.f32 0.0729, %v3234_v56  ;;  %v1357_v5 = vsub.f32 0.0729, %v3236_v43  ;;  %v1358_v61 = vsub.f32 0.0729, %v3238_v8  ;;  %v1363_v3 = vadd.f32 %v1347_v49, %v1331_v40 }
 0x102   : > { %v1364_v45 = vadd.f32 %v1348_v60, %v1332_v23  ;;  %v1365_v42 = vadd.f32 %v1349_v41, %v1333_v53  ;;  %v1366_v22 = vadd.f32 %v1350_v36, %v1334_v0  ;;  %v1367_v46 = vadd.f32 %v1351_v37, %v1335_v38  ;;  %v4106_v50 = vld [vmem:[#allocation67_spill] sm:$0xff] }
 0x103   : > { %v1368_v54 = vadd.f32 %v1352_v20, %v1336_v4  ;;  %v3428_v21 = vadd.f32 %v1353_v28, %v1337_v35  ;;  %v3430_v14 = vadd.f32 %v1354_v52, %v1338_v51  ;;  %v3432_v16 = vadd.f32 %v1355_v11, %v1339_v27  ;;  %v4102_v51 = vld [vmem:[#allocation54_spill] sm:$0xff]  ;;  %v4107_v31 = vld [vmem:[#allocation71_spill] sm:$0xff] }
 0x104   : > { %v3434_v56 = vadd.f32 %v1356_v9, %v1340_v57  ;;  %v3436_v43 = vadd.f32 %v1357_v5, %v1341_v17  ;;  %v3438_v8 = vadd.f32 %v1358_v61, %v1342_v7  ;;  %v3441_v44 = vmul.f32 %v1359_v47, %v3327_v15  ;;  %v4103_v57 = vld [vmem:[#allocation61_spill] sm:$0xff]  ;;  %v4104_v17 = vld [vmem:[#allocation55_spill] sm:$0xff]  ;;  %v4111_v20 = vld [vmem:[#allocation62_spill] sm:$0xff] }
 0x105   : > { %v3444_v40 = vmul.f32 %v1360_v39, %v3330_v13  ;;  %v3447_v0 = vmul.f32 %v1361_v30, %v3335_v25  ;;  %v1391_v38 = vadd.f32 0.0081, %v3310_v55  ;;  %v1392_v48 = vadd.f32 0.0081, %v3312_v1  ;;  %v4110_v41 = vld [vmem:[#allocation23_spill] sm:$0xff]  ;;  %v4114_v9 = vld [vmem:[#allocation24_spill] sm:$0xff] }
 0x106   : > { %4098 = vst [vmem:[#allocation18_spill] sm:$0xff] %v3438_v8  ;;  %v3452_v23 = vmul.f32 %v1362_v24, %v3338_v33  ;;  %v1393_v4 = vadd.f32 0.0081, %v3314_v26  ;;  %v1394_v29 = vadd.f32 0.0081, %v3316_v19  ;;  %v3458_v59 = vmul.f32 %v1363_v3, %v3341_v34  ;;  %v4113_v52 = vld [vmem:[#allocation13_spill] sm:$0xff] }
 0x107   : > { %v1395_v15 = vadd.f32 0.0081, %v3318_v2  ;;  %v1396_v13 = vadd.f32 0.0081, %v3320_v62  ;;  %v3462_v25 = vadd.f32 0.0081, %v3322_v58  ;;  %v3468_v33 = vmul.f32 %v1364_v45, %v3346_v12 }
 0x108   : > { %4099 = vst [vmem:[#allocation22_spill] sm:$0xff] %v3452_v23  ;;  %4100 = vst [vmem:[#allocation26_spill] sm:$0xff] %v3458_v59  ;;  %v3465_v53 = vadd.f32 0.0081, %v3324_v32  ;;  %v3471_v35 = vadd.f32 0.0081, %v3332_v6  ;;  %v3480_v63 = vmul.f32 %v1365_v42, %v4104_v17  ;;  %v3498_v28 = vmul.f32 %v1367_v46, %v4111_v20 }
 0x109   : > { %4101 = vst [vmem:[#allocation14_spill] sm:$0xff] %v3468_v33  ;;  %v3474_v27 = vadd.f32 0.0081, %v4102_v51  ;;  %v3477_v34 = vadd.f32 0.0081, %v4103_v57  ;;  %v4108_v45 = vld [vmem:[#allocation56_spill] sm:$0xff] }
 0x10a   : > { %4105 = vst [vmem:[#allocation15_spill] sm:$0xff] %v3480_v63  ;;  %v3483_v7 = vadd.f32 0.0081, %v4106_v50  ;;  %v3486_v18 = vadd.f32 0.0081, %v4107_v31  ;;  %v3490_v49 = vmul.f32 %v1366_v22, %v4108_v45  ;;  %v1408_v36 = vmul.f32 9.0, %v4110_v41 }
 0x10b   : > { %v1423_v12 = vsub.f32 0.0729, %v3310_v55  ;;  %v3493_v60 = vadd.f32 0.0081, %v3408_v10  ;;  %v1424_v37 = vsub.f32 0.0729, %v3312_v1 }
 0x10c   : > { %4109 = vst [vmem:[#allocation16_spill] sm:$0xff] %v3490_v49  ;;  %4112 = vst [vmem:[#allocation19_spill] sm:$0xff] %v3498_v28  ;;  %v3501_v11 = vadd.f32 0.0081, %v4113_v52  ;;  %v1409_v5 = vmul.f32 9.0, %v4114_v9  ;;  %v4115_v61 = vld [vmem:[#allocation63_spill] sm:$0xff] }
 0x10d   : > { %v1425_v55 = vsub.f32 0.0729, %v3314_v26  ;;  %v3506_v47 = vmul.f32 %v1368_v54, %v4115_v61  ;;  %v4117_v39 = vld [vmem:[#allocation17_spill] sm:$0xff]  ;;  %v1426_v1 = vsub.f32 0.0729, %v3316_v19  ;;  %v4119_v42 = vld [vmem:[#allocation27_spill] sm:$0xff] }
 0x10e   : > { %v3509_v30 = vadd.f32 0.0081, %v4117_v39  ;;  %v4118_v24 = vld [vmem:[#allocation25_spill] sm:$0xff]  ;;  %v1411_v46 = vmul.f32 9.0, %v4119_v42  ;;  %v4120_v22 = vld [vmem:[#allocation28_spill] sm:$0xff]  ;;  %v4121_v41 = vld [vmem:[#allocation74_spill] sm:$0xff] }
 0x10f   : > { %4116 = vst [vmem:[#allocation20_spill] sm:$0xff] %v3506_v47  ;;  %v1410_v3 = vmul.f32 9.0, %v4118_v24  ;;  %v1412_v17 = vmul.f32 9.0, %v4120_v22  ;;  %v1427_v45 = vsub.f32 0.0729, %v3318_v2  ;;  %v1439_v20 = vadd.f32 %v1423_v12, %v4121_v41  ;;  %v4122_v9 = vld [vmem:[#allocation29_spill] sm:$0xff] }
 0x110   : > { %v1413_v26 = vmul.f32 9.0, %v4122_v9  ;;  %v4123_v28 = vld [vmem:[#allocation30_spill] sm:$0xff]  ;;  %v1428_v61 = vsub.f32 0.0729, %v3320_v62  ;;  %v1440_v47 = vadd.f32 %v1424_v37, %v1408_v36  ;;  %v4124_v49 = vld [vmem:[#allocation31_spill] sm:$0xff]  ;;  %v4125_v24 = vld [vmem:[#allocation32_spill] sm:$0xff]  ;;  %v1441_v42 = vadd.f32 %v1425_v55, %v1409_v5 }
 0x111   : > { %v1414_v54 = vmul.f32 9.0, %v4123_v28  ;;  %v1415_v63 = vmul.f32 9.0, %v4124_v49  ;;  %v1416_v33 = vmul.f32 9.0, %v4125_v24  ;;  %v1429_v19 = vsub.f32 0.0729, %v3322_v58  ;;  %v4126_v59 = vld [vmem:[#allocation33_spill] sm:$0xff] }
 0x112   : > { %v1417_v22 = vmul.f32 9.0, %v4126_v59  ;;  %v4127_v23 = vld [vmem:[#allocation34_spill] sm:$0xff]  ;;  %v1430_v12 = vsub.f32 0.0729, %v3324_v32  ;;  %v1442_v41 = vadd.f32 %v1426_v1, %v1410_v3  ;;  %v4128_v9 = vld [vmem:[#allocation35_spill] sm:$0xff]  ;;  %v1443_v62 = vadd.f32 %v1427_v45, %v1411_v46  ;;  %v4130_v59 = vld [vmem:[#allocation48_spill] sm:$0xff] }
 0x113   : > { %v1418_v2 = vmul.f32 9.0, %v4127_v23  ;;  %v1419_v8 = vmul.f32 9.0, %v4128_v9  ;;  %v1431_v28 = vsub.f32 0.0729, %v3332_v6  ;;  %v3528_v36 = vmul.f32 %v1439_v20, %v1391_v38  ;;  %v4129_v49 = vld [vmem:[#allocation47_spill] sm:$0xff]  ;;  %v4131_v1 = vld [vmem:[#allocation49_spill] sm:$0xff] }
 0x114   : > { %v1420_v37 = vmul.f32 9.0, %v4129_v49  ;;  %v1432_v24 = vsub.f32 0.0729, %v4102_v51  ;;  %v1444_v58 = vadd.f32 %v1428_v61, %v1412_v17  ;;  %v3532_v5 = vmul.f32 %v1440_v47, %v1392_v48 }
 0x115   : > { %v1421_v55 = vmul.f32 9.0, %v4130_v59  ;;  %v1433_v23 = vsub.f32 0.0729, %v4103_v57  ;;  %v1445_v32 = vadd.f32 %v1429_v19, %v1413_v26  ;;  %v3536_v3 = vmul.f32 %v1441_v42, %v1393_v4 }
 0x116   : > { %v1422_v9 = vmul.f32 9.0, %v4131_v1  ;;  %v1434_v6 = vsub.f32 0.0729, %v4106_v50  ;;  %v1446_v38 = vadd.f32 %v1430_v12, %v1414_v54  ;;  %v3540_v46 = vmul.f32 %v1442_v41, %v1394_v29  ;;  %v4134_v41 = vld [vmem:[#allocation68_spill] sm:$0xff] }
 0x117   : > { %v1435_v45 = vsub.f32 0.0729, %v4107_v31  ;;  %v1447_v51 = vadd.f32 %v1431_v28, %v1415_v63  ;;  %v3543_v48 = vmul.f32 %v1443_v62, %v1395_v15  ;;  %v1487_v47 = vadd.f32 %v3528_v36, %v3528_v36 }
 0x118   : > { %v1436_v57 = vsub.f32 0.0729, %v3408_v10  ;;  %v1448_v4 = vadd.f32 %v1432_v24, %v1416_v33  ;;  %v3548_v17 = vmul.f32 %v1444_v58, %v1396_v13  ;;  %v1488_v50 = vadd.f32 %v3532_v5, %v3532_v5 }
 0x119   : > { %v1437_v29 = vsub.f32 0.0729, %v4113_v52  ;;  %v1449_v20 = vadd.f32 %v1433_v23, %v1417_v22  ;;  %v3554_v31 = vmul.f32 %v1445_v32, %v3462_v25  ;;  %v1489_v15 = vadd.f32 %v3536_v3, %v3536_v3  ;;  %v4138_v23 = vld [vmem:[#allocation73_spill] sm:$0xff]  ;;  %v4139_v32 = vld [vmem:[#allocation18_spill] sm:$0xff] }
 0x11a   : > { %v1438_v63 = vsub.f32 0.0729, %v4117_v39  ;;  %v1450_v26 = vadd.f32 %v1434_v6, %v1418_v2  ;;  %v3560_v10 = vmul.f32 %v1446_v38, %v3465_v53  ;;  %v1490_v13 = vadd.f32 %v3540_v46, %v3540_v46  ;;  %v4141_v6 = vld [vmem:[#allocation26_spill] sm:$0xff] }
 0x11b   : > { %v1451_v33 = vadd.f32 %v1435_v45, %v1419_v8  ;;  %v3566_v52 = vmul.f32 %v1447_v51, %v3471_v35  ;;  %v1491_v25 = vadd.f32 %v3543_v48, %v3543_v48  ;;  %1724 = vrcp.f32 %v1487_v47  ;;  %v4142_v51 = vld [vmem:[#allocation14_spill] sm:$0xff] }
 0x11c   : > { %v1452_v54 = vadd.f32 %v1436_v57, %v1420_v37  ;;  %v3571_v39 = vmul.f32 %v1448_v4, %v3474_v27  ;;  %v1492_v53 = vadd.f32 %v3548_v17, %v3548_v17  ;;  %1726 = vrcp.f32 %v1488_v50  ;;  %v4143_v57 = vld [vmem:[#allocation15_spill] sm:$0xff] }
 0x11d   : > { %v1453_v61 = vadd.f32 %v1437_v29, %v1421_v55  ;;  %v3576_v19 = vmul.f32 %v1449_v20, %v3477_v34  ;;  %v1493_v8 = vadd.f32 %v3554_v31, %v3554_v31  ;;  %1728 = vrcp.f32 %v1489_v15  ;;  %v4133_v34 = vld [vmem:[#allocation66_spill] sm:$0xff]  ;;  %v4144_v29 = vld [vmem:[#allocation16_spill] sm:$0xff] }
 0x11e   : > { %v1454_v35 = vadd.f32 %v1438_v63, %v1422_v9  ;;  %v3587_v27 = vmul.f32 %v1450_v26, %v3483_v7  ;;  %v1494_v42 = vadd.f32 %v3560_v10, %v3560_v10  ;;  %1730 = vrcp.f32 %v1490_v13  ;;  %v4145_v26 = vld [vmem:[#allocation19_spill] sm:$0xff] }
 0x11f   : > { %v3593_v22 = vmul.f32 %v3428_v21, %v4133_v34  ;;  %v3596_v2 = vmul.f32 %v1451_v33, %v3486_v18  ;;  %v1495_v12 = vadd.f32 %v3566_v52, %v3566_v52  ;;  %1732 = vrcp.f32 %v1491_v25  ;;  %v4135_v21 = vld [vmem:[#allocation69_spill] sm:$0xff] }
 0x120   : > { %v3602_v28 = vmul.f32 %v3430_v14, %v4134_v41  ;;  %v3605_v7 = vmul.f32 %v1452_v54, %v3493_v60  ;;  %v1496_v62 = vadd.f32 %v3571_v39, %v3571_v39  ;;  %1734 = vrcp.f32 %v1492_v53 }
 0x121   : > { %v3611_v49 = vmul.f32 %v3432_v16, %v4135_v21  ;;  %v3614_v18 = vmul.f32 %v1453_v61, %v3501_v11  ;;  %v1497_v37 = vadd.f32 %v3576_v19, %v3576_v19  ;;  %1736 = vrcp.f32 %v1493_v8  ;;  %v4136_v11 = vld [vmem:[#allocation70_spill] sm:$0xff]  ;;  %v4146_v61 = vld [vmem:[#allocation20_spill] sm:$0xff] }
 0x122   : > { %v3625_v14 = vmul.f32 %v1454_v35, %v3509_v30  ;;  %v1471_v60 = vsub.f32 %v3528_v36, %v3441_v44  ;;  %v1498_v16 = vadd.f32 %v3587_v27, %v3587_v27  ;;  %1738 = vrcp.f32 %v1494_v42  ;;  %v4137_v30 = vld [vmem:[#allocation72_spill] sm:$0xff] }
 0x123   : > { %v3633_v24 = vmul.f32 %v3434_v56, %v4136_v11  ;;  %v1472_v58 = vsub.f32 %v3532_v5, %v3444_v40  ;;  %v1499_v59 = vadd.f32 %v3596_v2, %v3596_v2  ;;  %1740 = vrcp.f32 %v1495_v12  ;;  %v4140_v40 = vld [vmem:[#allocation22_spill] sm:$0xff] }
 0x124   : > { %v3641_v55 = vmul.f32 %v3436_v43, %v4137_v30  ;;  %v1473_v44 = vsub.f32 %v3536_v3, %v3447_v0  ;;  %v1500_v36 = vadd.f32 %v3605_v7, %v3605_v7  ;;  %1742 = vrcp.f32 %v1496_v62 }
 0x125   : > { %v1725_v56 = vpop.eup %1724  ;;  %v3649_v1 = vmul.f32 %v4139_v32, %v4138_v23  ;;  %v1474_v5 = vsub.f32 %v3540_v46, %v4140_v40  ;;  %v1501_v9 = vadd.f32 %v3614_v18, %v3614_v18  ;;  %1744 = vrcp.f32 %v1497_v37 }
 0x126   : > { %v1727_v43 = vpop.eup %1726  ;;  %v1475_v0 = vsub.f32 %v3543_v48, %v4141_v6  ;;  %v1502_v3 = vadd.f32 %v3625_v14, %v3625_v14  ;;  %1746 = vrcp.f32 %v1498_v16  ;;  %v1519_v38 = vmul.f32 %v1725_v56, %v1471_v60 }
 0x127   : > { %v1729_v45 = vpop.eup %1728  ;;  %v1476_v47 = vsub.f32 %v3548_v17, %v4142_v51  ;;  %v1477_v46 = vsub.f32 %v3554_v31, %v4143_v57  ;;  %1748 = vrcp.f32 %v1499_v59  ;;  %v1520_v4 = vmul.f32 %v1727_v43, %v1472_v58 }
 0x128   : > { %v1731_v50 = vpop.eup %1730  ;;  %v1478_v20 = vsub.f32 %v3560_v10, %v4144_v29  ;;  %1750 = vrcp.f32 %v1500_v36  ;;  %v1521_v48 = vmul.f32 %v1729_v45, %v1473_v44  ;;  %v1535_v15 = vmax.f32 %v1519_v38, 0.0 }
 0x129   : > { %v1733_v63 = vpop.eup %1732  ;;  %v1479_v17 = vsub.f32 %v3566_v52, %v4145_v26  ;;  %1752 = vrcp.f32 %v1501_v9  ;;  %v1522_v31 = vmul.f32 %v1731_v50, %v1474_v5  ;;  %v1536_v13 = vmax.f32 %v1520_v4, 0.0 }
 0x12a   : > { %v1735_v33 = vpop.eup %1734  ;;  %1754 = vrcp.f32 %v1502_v3  ;;  %v1523_v25 = vmul.f32 %v1733_v63, %v1475_v0  ;;  %v1537_v10 = vmax.f32 %v1521_v48, 0.0  ;;  %v1551_v54 = vmin.f32 %v1535_v15, 1.0 }
 0x12b   : > { %v1737_v53 = vpop.eup %1736  ;;  %v1480_v8 = vsub.f32 %v3571_v39, %v4146_v61  ;;  %v1524_v35 = vmul.f32 %v1735_v33, %v1476_v47  ;;  %v1538_v42 = vmax.f32 %v1522_v31, 0.0  ;;  %v1552_v34 = vmin.f32 %v1536_v13, 1.0 }
 0x12c   : > { %v1739_v12 = vpop.eup %1738  ;;  %v1481_v52 = vsub.f32 %v3576_v19, %v3593_v22  ;;  %v1525_v41 = vmul.f32 %v1737_v53, %v1477_v46  ;;  %v1539_v62 = vmax.f32 %v1523_v25, 0.0  ;;  %v1553_v21 = vmin.f32 %v1537_v10, 1.0  ;;  %1567 = vst [vmem:[%s3669_s25] sm:$0xff] %v1551_v54 }
 0x12d   : > { %v1741_v37 = vpop.eup %1740  ;;  %v1482_v60 = vsub.f32 %v3587_v27, %v3602_v28  ;;  %v1526_v16 = vmul.f32 %v1739_v12, %v1478_v20  ;;  %v1540_v11 = vmax.f32 %v1524_v35, 0.0  ;;  %v1554_v39 = vmin.f32 %v1538_v42, 1.0  ;;  %1568 = vst [vmem:[%s3669_s25 + $0x8] sm:$0xff] %v1552_v34 }
 0x12e   : > { %v1743_v58 = vpop.eup %1742  ;;  %v1483_v59 = vsub.f32 %v3596_v2, %v3611_v49  ;;  %v1527_v19 = vmul.f32 %v1741_v37, %v1479_v17  ;;  %v1541_v22 = vmax.f32 %v1525_v41, 0.0  ;;  %v1555_v30 = vmin.f32 %v1539_v62, 1.0  ;;  %1569 = vst [vmem:[%s3669_s25 + $0x10] sm:$0xff] %v1553_v21 }
 0x12f   : > { %v1745_v44 = vpop.eup %1744  ;;  %v1484_v36 = vsub.f32 %v3605_v7, %v3633_v24  ;;  %v1528_v27 = vmul.f32 %v1743_v58, %v1480_v8  ;;  %v1542_v28 = vmax.f32 %v1526_v16, 0.0  ;;  %v1556_v56 = vmin.f32 %v1540_v11, 1.0  ;;  %1570 = vst [vmem:[%s3669_s25 + $0x18] sm:$0xff] %v1554_v39 }
 0x130   : > { %v1747_v23 = vpop.eup %1746  ;;  %v1485_v32 = vsub.f32 %v3614_v18, %v3641_v55  ;;  %v1529_v2 = vmul.f32 %v1745_v44, %v1481_v52  ;;  %v1543_v49 = vmax.f32 %v1527_v19, 0.0  ;;  %v1557_v40 = vmin.f32 %v1541_v22, 1.0  ;;  %1571 = vst [vmem:[%s3669_s25 + $0x20] sm:$0xff] %v1555_v30 }
 0x131   : > { %v1749_v5 = vpop.eup %1748  ;;  %v1486_v9 = vsub.f32 %v3625_v14, %v3649_v1  ;;  %v1530_v7 = vmul.f32 %v1747_v23, %v1482_v60  ;;  %v1544_v24 = vmax.f32 %v1528_v27, 0.0  ;;  %v1558_v43 = vmin.f32 %v1542_v28, 1.0  ;;  %1572 = vst [vmem:[%s3669_s25 + $0x28] sm:$0xff] %v1556_v56 }
 0x132   : > { %v1751_v6 = vpop.eup %1750  ;;  %v1531_v0 = vmul.f32 %v1749_v5, %v1483_v59  ;;  %v1545_v3 = vmax.f32 %v1529_v2, 0.0  ;;  %v1559_v38 = vmin.f32 %v1543_v49, 1.0  ;;  %1573 = vst [vmem:[%s3669_s25 + $0x30] sm:$0xff] %v1557_v40 }
 0x133   : > { %v1753_v18 = vpop.eup %1752  ;;  %v1532_v55 = vmul.f32 %v1751_v6, %v1484_v36  ;;  %v1546_v45 = vmax.f32 %v1530_v7, 0.0  ;;  %v1560_v51 = vmin.f32 %v1544_v24, 1.0  ;;  %1574 = vst [vmem:[%s3669_s25 + $0x38] sm:$0xff] %v1558_v43 }
 0x134   : > { %v1755_v47 = vpop.eup %1754  ;;  %v1533_v14 = vmul.f32 %v1753_v18, %v1485_v32  ;;  %v1547_v1 = vmax.f32 %v1531_v0, 0.0  ;;  %v1561_v57 = vmin.f32 %v1545_v3, 1.0  ;;  %1575 = vst [vmem:[%s3669_s25 + $0x40] sm:$0xff] %v1559_v38 }
 0x135   : > { %v1534_v46 = vmul.f32 %v1755_v47, %v1486_v9  ;;  %v1548_v4 = vmax.f32 %v1532_v55, 0.0  ;;  %v1562_v50 = vmin.f32 %v1546_v45, 1.0  ;;  %1576 = vst [vmem:[%s3669_s25 + $0x48] sm:$0xff] %v1560_v51 }
 0x136   : > { %v1549_v29 = vmax.f32 %v1533_v14, 0.0  ;;  %v1563_v20 = vmin.f32 %v1547_v1, 1.0  ;;  %1577 = vst [vmem:[%s3669_s25 + $0x50] sm:$0xff] %v1561_v57 }
 0x137   : > { %v1550_v48 = vmax.f32 %v1534_v46, 0.0  ;;  %v1564_v15 = vmin.f32 %v1548_v4, 1.0  ;;  %1578 = vst [vmem:[%s3669_s25 + $0x58] sm:$0xff] %v1562_v50 }
 0x138   : > { %v1565_v63 = vmin.f32 %v1549_v29, 1.0  ;;  %1579 = vst [vmem:[%s3669_s25 + $0x60] sm:$0xff] %v1563_v20 }
 0x139   : > { %v1566_v26 = vmin.f32 %v1550_v48, 1.0  ;;  %1580 = vst [vmem:[%s3669_s25 + $0x68] sm:$0xff] %v1564_v15 }
 0x13a   : > { %1581 = vst [vmem:[%s3669_s25 + $0x70] sm:$0xff] %v1565_v63 }
 0x13b   : > { %1582 = vst [vmem:[%s3669_s25 + $0x78] sm:$0xff] %v1566_v26 }
 0x13c PF: > { %s12_s11 = sadd.s32 1, %s1809_s11   ;;  %s4147_s9 = smov %s1805_s10 }
 0x13d   : > { %p9_p5 = scmp.ge.s32.totalorder %s12_s11, 4   ;;  %s4148_s10 = smov %s4150_s12 }
 0x13f   :  { %11 = sbr.rel (!%p9_p5) target bundleno = 2 (0x2), region = 63 }

</bundles_post_ra>
